<compile_context>
chip_gen: v6e
topology: v6e:2x2x1
jax: 0.10.0
libtpu: 0.0.40
codegen_flags: <defaults>
</compile_context>

<pallas_src>
import functools
import math

import jax
import jax.numpy as jnp
from jax.experimental import pallas as pl
from jax.experimental.pallas import tpu as pltpu


def _rotnet_loss_kernel(gt_box_ref, pred_rot_ref, logits_ref,
                        emd_min_ref, nll_ref, *, sigma, beta):
    LOG_EPS = math.log(1e-6)

    def gt(e):
        # static slice -> (1, Nt), narrow per-part quantity broadcast over K sublanes
        return gt_box_ref[e:e + 1, :]

    # ---- GT rotation from the 6D (x-dir, y-dir) representation (Gram-Schmidt) ----
    size = [gt(3 + d) for d in range(3)]                 # (1, Nt)
    a1 = [gt(6 + d) for d in range(3)]
    a2 = [gt(9 + d) for d in range(3)]

    ss1 = a1[0] * a1[0] + a1[1] * a1[1] + a1[2] * a1[2]
    inv1 = jax.lax.rsqrt(jnp.maximum(ss1, 1e-24))        # == 1/max(sqrt(ss1), 1e-12)
    b1 = [a1[d] * inv1 for d in range(3)]
    dot = b1[0] * a2[0] + b1[1] * a2[1] + b1[2] * a2[2]
    u2 = [a2[d] - dot * b1[d] for d in range(3)]
    ss2 = u2[0] * u2[0] + u2[1] * u2[1] + u2[2] * u2[2]
    inv2 = jax.lax.rsqrt(jnp.maximum(ss2, 1e-24))
    b2 = [u2[d] * inv2 for d in range(3)]
    b3 = [b1[1] * b2[2] - b1[2] * b2[1],
          b1[2] * b2[0] - b1[0] * b2[2],
          b1[0] * b2[1] - b1[1] * b2[0]]
    # GT rotation with columns [b1, b2, b3]; g[r][c] has shape (1, Nt)
    cols = [b1, b2, b3]
    g = [[cols[c][r] for c in range(3)] for r in range(3)]

    # ---- predicted rotations: p[r][c] has shape (K, Nt) ----
    p = [[pred_rot_ref[3 * r + c] for c in range(3)] for r in range(3)]

    # ---- min-over-symmetry EMD between the 8 rotated box corners ----
    half = [0.5 * size[d] for d in range(3)]
    # one representative per antipodal corner pair: d(-c) == d(c), so 4 corners suffice
    rep_corners = [(1., 1., 1.), (1., 1., -1.), (1., -1., 1.), (1., -1., -1.)]
    cx = [[half[d] * cs[d] for d in range(3)] for cs in rep_corners]       # (1, Nt)

    # hoist: predicted rotation applied to each corner, computed ONCE (wide (K, Nt) work)
    pc = [[p[r][0] * cx[j][0] + p[r][1] * cx[j][1] + p[r][2] * cx[j][2]
           for r in range(3)] for j in range(4)]

    sym_signs = [(1., 1., 1.), (1., -1., -1.), (-1., 1., -1.), (-1., -1., 1.)]
    emd = None
    for s in sym_signs:
        acc = None
        for j in range(4):
            # GT rotation applied to sign-flipped corner: narrow (1, Nt) work only
            scx = [s[c] * cx[j][c] for c in range(3)]
            gc = [g[r][0] * scx[0] + g[r][1] * scx[1] + g[r][2] * scx[2]
                  for r in range(3)]                                        # (1, Nt)
            v = [gc[r] - pc[j][r] for r in range(3)]                        # (K, Nt)
            dist = jnp.sqrt(v[0] * v[0] + v[1] * v[1] + v[2] * v[2])
            acc = dist if acc is None else acc + dist
        # mean over all 8 corners = 2 * sum_over_4_representatives / 8 = acc / 4
        d_sym = acc * 0.25
        emd = d_sym if emd is None else jnp.minimum(emd, d_sym)             # (K, Nt)

    # per-part min over candidates (emd_dist_min), lane-dense store
    emd_min_ref[...] = jnp.min(emd, axis=0, keepdims=True)                  # (1, Nt)

    # ---- log-softmax over candidates + soft-min NLL ----
    logits = logits_ref[...]                                                # (K, Nt)
    m = jnp.max(logits, axis=0, keepdims=True)
    z = jnp.sum(jnp.exp(logits - m), axis=0, keepdims=True)
    # log(clamp(softmax, 1e-6)) == max(log_softmax, log(1e-6))  (log is monotone)
    log_probs = jnp.maximum((logits - m) - jnp.log(z), LOG_EPS)
    log_exp = log_probs - emd * (1.0 / sigma)
    mm = jnp.max(log_exp, axis=0, keepdims=True)
    lse = mm + jnp.log(jnp.sum(jnp.exp(log_exp - mm), axis=0, keepdims=True))
    nll_ref[...] = (-lse) * beta                                            # (1, Nt)


def rotnet_loss(preds, labels, choice='MixMinNEMD-0.1', mode='train'):
    gt_box = labels['gt_box']                               # (B, P, 12)
    B, P, D = gt_box.shape
    N = B * P
    sigma = float(choice.split('-')[1])
    beta = 1.0

    rots = preds['rots']                                    # (N, K, 3, 3)
    K = rots.shape[1]

    LANE = 128
    MAX_TILE = 2048                                         # ~1.5 MiB/block at K=8; fits v5e/v6e/v7x
    n_lane = ((N + LANE - 1) // LANE) * LANE
    n_tile = min(MAX_TILE, n_lane)
    n_pad = ((n_lane + n_tile - 1) // n_tile) * n_tile
    pad = n_pad - N

    # glue: re-layout so N is lane-dense (last dim) and K sits on sublanes.
    # TODO(synk): ideally produce rots / gt_box in this layout upstream to skip transposes.
    gt_box_t = jnp.transpose(gt_box.reshape(N, D).astype(jnp.float32))                 # (12, N)
    pred_rot_t = jnp.transpose(rots.reshape(N, K, 9).astype(jnp.float32), (2, 1, 0))   # (9, K, N)
    logits_t = jnp.transpose(preds['rot_logits'].reshape(N, K).astype(jnp.float32))    # (K, N)

    if pad:
        # zero padding is safe: lanes are independent and padded outputs are sliced off
        gt_box_t = jnp.pad(gt_box_t, ((0, 0), (0, pad)))
        pred_rot_t = jnp.pad(pred_rot_t, ((0, 0), (0, 0), (0, pad)))
        logits_t = jnp.pad(logits_t, ((0, 0), (0, pad)))

    kernel = functools.partial(_rotnet_loss_kernel, sigma=sigma, beta=beta)
    emd_min_p, nll_p = pl.pallas_call(
        kernel,
        out_shape=(jax.ShapeDtypeStruct((1, n_pad), jnp.float32),
                   jax.ShapeDtypeStruct((1, n_pad), jnp.float32)),
        grid=(n_pad // n_tile,),
        in_specs=[pl.BlockSpec((D, n_tile), lambda i: (0, i)),
                  pl.BlockSpec((9, K, n_tile), lambda i: (0, 0, i)),
                  pl.BlockSpec((K, n_tile), lambda i: (0, i))],
        out_specs=(pl.BlockSpec((1, n_tile), lambda i: (0, i)),
                   pl.BlockSpec((1, n_tile), lambda i: (0, i))),
        compiler_params=pltpu.CompilerParams(
            dimension_semantics=("parallel",)),
    )(gt_box_t, pred_rot_t, logits_t)

    emd_min = emd_min_p[0, :N]
    nll = nll_p[0, :N]

    losses = {}
    if mode != 'test':
        losses['loss-prior-emd'] = jnp.mean(emd_min)        # emd_dist_min.mean()
        losses['loss-nll'] = jnp.mean(nll)                  # nll.mean()
    else:
        losses['loss-prior-emd'] = emd_min
    return losses


def _rotmats_from_6d(x6):
    """Glue (input construction only): 6D -> rotation matrices with columns [b1,b2,b3]."""
    a1, a2 = x6[:, :3], x6[:, 3:]
    b1 = a1 / jnp.maximum(jnp.linalg.norm(a1, axis=-1, keepdims=True), 1e-12)
    u2 = a2 - jnp.sum(b1 * a2, axis=-1, keepdims=True) * b1
    b2 = u2 / jnp.maximum(jnp.linalg.norm(u2, axis=-1, keepdims=True), 1e-12)
    b3 = jnp.cross(b1, b2)
    return jnp.stack([b1, b2, b3], axis=-1)


if __name__ == "__main__":
    key = jax.random.PRNGKey(0)
    B, P, K = 2, 4, 8
    N = B * P

    k1, k2, k3, k4, k5 = jax.random.split(key, 5)
    center = jax.random.normal(k1, (B, P, 3), jnp.float32)
    box_size = jax.random.uniform(k2, (B, P, 3), jnp.float32, minval=0.2, maxval=1.5)
    xydir = jax.random.normal(k3, (B, P, 6), jnp.float32)
    gt_box = jnp.concatenate([center, box_size, xydir], axis=-1)    # (B, P, 12)

    pred_6d = jax.random.normal(k4, (N * K, 6), jnp.float32)
    pred_rots = _rotmats_from_6d(pred_6d).reshape(N, K, 3, 3)
    rot_logits = jax.random.normal(k5, (N, K, 1), jnp.float32)

    preds = {'rots': pred_rots, 'rot_logits': rot_logits}
    labels = {'gt_box': gt_box}

    losses = rotnet_loss(preds, labels, choice='MixMinNEMD-0.1', mode='train')
    losses = jax.block_until_ready(losses)

    assert bool(jnp.isfinite(losses['loss-prior-emd']))
    assert bool(jnp.isfinite(losses['loss-nll']))
    print("KERNEL_OK")
</pallas_src>

<mosaic_0001>
module attributes {stable_mosaic.version = 11 : i64} {
  func.func @_rotnet_loss_kernel(%arg0: i32, %arg1: memref<12x128xf32, #tpu.memory_space<vmem>>, %arg2: memref<9x8x128xf32, #tpu.memory_space<vmem>>, %arg3: memref<8x128xf32, #tpu.memory_space<vmem>>, %arg4: memref<1x128xf32, #tpu.memory_space<vmem>>, %arg5: memref<1x128xf32, #tpu.memory_space<vmem>>) attributes {dimension_semantics = [#tpu.dimension_semantics<parallel>], iteration_bounds = array<i64: 1>, scalar_prefetch = 0 : i64, scratch_operands = 0 : i64, tpu.core_type = #tpu.core_type<tc>, window_params = [{transform_indices = @transform_0, window_bounds = array<i64: 12, 128>}, {transform_indices = @transform_1, window_bounds = array<i64: 9, 8, 128>}, {transform_indices = @transform_2, window_bounds = array<i64: 8, 128>}, {transform_indices = @transform_3, window_bounds = array<i64: 1, 128>}, {transform_indices = @transform_4, window_bounds = array<i64: 1, 128>}]} {
    %c3 = arith.constant 3 : index
    %c0 = arith.constant 0 : index
    %0 = vector.load %arg1[%c3, %c0] : memref<12x128xf32, #tpu.memory_space<vmem>>, vector<1x128xf32>
    %c4 = arith.constant 4 : index
    %c0_0 = arith.constant 0 : index
    %1 = vector.load %arg1[%c4, %c0_0] : memref<12x128xf32, #tpu.memory_space<vmem>>, vector<1x128xf32>
    %c5 = arith.constant 5 : index
    %c0_1 = arith.constant 0 : index
    %2 = vector.load %arg1[%c5, %c0_1] : memref<12x128xf32, #tpu.memory_space<vmem>>, vector<1x128xf32>
    %c6 = arith.constant 6 : index
    %c0_2 = arith.constant 0 : index
    %3 = vector.load %arg1[%c6, %c0_2] : memref<12x128xf32, #tpu.memory_space<vmem>>, vector<1x128xf32>
    %c7 = arith.constant 7 : index
    %c0_3 = arith.constant 0 : index
    %4 = vector.load %arg1[%c7, %c0_3] : memref<12x128xf32, #tpu.memory_space<vmem>>, vector<1x128xf32>
    %c8 = arith.constant 8 : index
    %c0_4 = arith.constant 0 : index
    %5 = vector.load %arg1[%c8, %c0_4] : memref<12x128xf32, #tpu.memory_space<vmem>>, vector<1x128xf32>
    %c9 = arith.constant 9 : index
    %c0_5 = arith.constant 0 : index
    %6 = vector.load %arg1[%c9, %c0_5] : memref<12x128xf32, #tpu.memory_space<vmem>>, vector<1x128xf32>
    %c10 = arith.constant 10 : index
    %c0_6 = arith.constant 0 : index
    %7 = vector.load %arg1[%c10, %c0_6] : memref<12x128xf32, #tpu.memory_space<vmem>>, vector<1x128xf32>
    %c11 = arith.constant 11 : index
    %c0_7 = arith.constant 0 : index
    %8 = vector.load %arg1[%c11, %c0_7] : memref<12x128xf32, #tpu.memory_space<vmem>>, vector<1x128xf32>
    %9 = arith.mulf %3, %3 : vector<1x128xf32>
    %10 = arith.mulf %4, %4 : vector<1x128xf32>
    %11 = arith.addf %9, %10 : vector<1x128xf32>
    %12 = arith.mulf %5, %5 : vector<1x128xf32>
    %13 = arith.addf %11, %12 : vector<1x128xf32>
    %cst = arith.constant 1.000000e-24 : f32
    %14 = vector.broadcast %cst : f32 to vector<1x128xf32>
    %15 = arith.maximumf %13, %14 : vector<1x128xf32>
    %16 = math.rsqrt %15 : vector<1x128xf32>
    %17 = arith.mulf %3, %16 : vector<1x128xf32>
    %18 = arith.mulf %4, %16 : vector<1x128xf32>
    %19 = arith.mulf %5, %16 : vector<1x128xf32>
    %20 = arith.mulf %17, %6 : vector<1x128xf32>
    %21 = arith.mulf %18, %7 : vector<1x128xf32>
    %22 = arith.addf %20, %21 : vector<1x128xf32>
    %23 = arith.mulf %19, %8 : vector<1x128xf32>
    %24 = arith.addf %22, %23 : vector<1x128xf32>
    %25 = arith.mulf %24, %17 : vector<1x128xf32>
    %26 = arith.subf %6, %25 : vector<1x128xf32>
    %27 = arith.mulf %24, %18 : vector<1x128xf32>
    %28 = arith.subf %7, %27 : vector<1x128xf32>
    %29 = arith.mulf %24, %19 : vector<1x128xf32>
    %30 = arith.subf %8, %29 : vector<1x128xf32>
    %31 = arith.mulf %26, %26 : vector<1x128xf32>
    %32 = arith.mulf %28, %28 : vector<1x128xf32>
    %33 = arith.addf %31, %32 : vector<1x128xf32>
    %34 = arith.mulf %30, %30 : vector<1x128xf32>
    %35 = arith.addf %33, %34 : vector<1x128xf32>
    %cst_8 = arith.constant 1.000000e-24 : f32
    %36 = vector.broadcast %cst_8 : f32 to vector<1x128xf32>
    %37 = arith.maximumf %35, %36 : vector<1x128xf32>
    %38 = math.rsqrt %37 : vector<1x128xf32>
    %39 = arith.mulf %26, %38 : vector<1x128xf32>
    %40 = arith.mulf %28, %38 : vector<1x128xf32>
    %41 = arith.mulf %30, %38 : vector<1x128xf32>
    %42 = arith.mulf %18, %41 : vector<1x128xf32>
    %43 = arith.mulf %19, %40 : vector<1x128xf32>
    %44 = arith.subf %42, %43 : vector<1x128xf32>
    %45 = arith.mulf %19, %39 : vector<1x128xf32>
    %46 = arith.mulf %17, %41 : vector<1x128xf32>
    %47 = arith.subf %45, %46 : vector<1x128xf32>
    %48 = arith.mulf %17, %40 : vector<1x128xf32>
    %49 = arith.mulf %18, %39 : vector<1x128xf32>
    %50 = arith.subf %48, %49 : vector<1x128xf32>
    %c0_9 = arith.constant 0 : index
    %c0_10 = arith.constant 0 : index
    %c0_11 = arith.constant 0 : index
    %51 = vector.load %arg2[%c0_9, %c0_10, %c0_11] : memref<9x8x128xf32, #tpu.memory_space<vmem>>, vector<1x8x128xf32>
    %52 = vector.shape_cast %51 : vector<1x8x128xf32> to vector<8x128xf32>
    %c1 = arith.constant 1 : index
    %c0_12 = arith.constant 0 : index
    %c0_13 = arith.constant 0 : index
    %53 = vector.load %arg2[%c1, %c0_12, %c0_13] : memref<9x8x128xf32, #tpu.memory_space<vmem>>, vector<1x8x128xf32>
    %54 = vector.shape_cast %53 : vector<1x8x128xf32> to vector<8x128xf32>
    %c2 = arith.constant 2 : index
    %c0_14 = arith.constant 0 : index
    %c0_15 = arith.constant 0 : index
    %55 = vector.load %arg2[%c2, %c0_14, %c0_15] : memref<9x8x128xf32, #tpu.memory_space<vmem>>, vector<1x8x128xf32>
    %56 = vector.shape_cast %55 : vector<1x8x128xf32> to vector<8x128xf32>
    %c3_16 = arith.constant 3 : index
    %c0_17 = arith.constant 0 : index
    %c0_18 = arith.constant 0 : index
    %57 = vector.load %arg2[%c3_16, %c0_17, %c0_18] : memref<9x8x128xf32, #tpu.memory_space<vmem>>, vector<1x8x128xf32>
    %58 = vector.shape_cast %57 : vector<1x8x128xf32> to vector<8x128xf32>
    %c4_19 = arith.constant 4 : index
    %c0_20 = arith.constant 0 : index
    %c0_21 = arith.constant 0 : index
    %59 = vector.load %arg2[%c4_19, %c0_20, %c0_21] : memref<9x8x128xf32, #tpu.memory_space<vmem>>, vector<1x8x128xf32>
    %60 = vector.shape_cast %59 : vector<1x8x128xf32> to vector<8x128xf32>
    %c5_22 = arith.constant 5 : index
    %c0_23 = arith.constant 0 : index
    %c0_24 = arith.constant 0 : index
    %61 = vector.load %arg2[%c5_22, %c0_23, %c0_24] : memref<9x8x128xf32, #tpu.memory_space<vmem>>, vector<1x8x128xf32>
    %62 = vector.shape_cast %61 : vector<1x8x128xf32> to vector<8x128xf32>
    %c6_25 = arith.constant 6 : index
    %c0_26 = arith.constant 0 : index
    %c0_27 = arith.constant 0 : index
    %63 = vector.load %arg2[%c6_25, %c0_26, %c0_27] : memref<9x8x128xf32, #tpu.memory_space<vmem>>, vector<1x8x128xf32>
    %64 = vector.shape_cast %63 : vector<1x8x128xf32> to vector<8x128xf32>
    %c7_28 = arith.constant 7 : index
    %c0_29 = arith.constant 0 : index
    %c0_30 = arith.constant 0 : index
    %65 = vector.load %arg2[%c7_28, %c0_29, %c0_30] : memref<9x8x128xf32, #tpu.memory_space<vmem>>, vector<1x8x128xf32>
    %66 = vector.shape_cast %65 : vector<1x8x128xf32> to vector<8x128xf32>
    %c8_31 = arith.constant 8 : index
    %c0_32 = arith.constant 0 : index
    %c0_33 = arith.constant 0 : index
    %67 = vector.load %arg2[%c8_31, %c0_32, %c0_33] : memref<9x8x128xf32, #tpu.memory_space<vmem>>, vector<1x8x128xf32>
    %68 = vector.shape_cast %67 : vector<1x8x128xf32> to vector<8x128xf32>
    %cst_34 = arith.constant 5.000000e-01 : f32
    %69 = vector.broadcast %cst_34 : f32 to vector<1x128xf32>
    %70 = arith.mulf %69, %0 : vector<1x128xf32>
    %cst_35 = arith.constant 5.000000e-01 : f32
    %71 = vector.broadcast %cst_35 : f32 to vector<1x128xf32>
    %72 = arith.mulf %71, %1 : vector<1x128xf32>
    %cst_36 = arith.constant 5.000000e-01 : f32
    %73 = vector.broadcast %cst_36 : f32 to vector<1x128xf32>
    %74 = arith.mulf %73, %2 : vector<1x128xf32>
    %cst_37 = arith.constant 1.000000e+00 : f32
    %75 = vector.broadcast %cst_37 : f32 to vector<1x128xf32>
    %76 = arith.mulf %70, %75 : vector<1x128xf32>
    %cst_38 = arith.constant 1.000000e+00 : f32
    %77 = vector.broadcast %cst_38 : f32 to vector<1x128xf32>
    %78 = arith.mulf %72, %77 : vector<1x128xf32>
    %cst_39 = arith.constant 1.000000e+00 : f32
    %79 = vector.broadcast %cst_39 : f32 to vector<1x128xf32>
    %80 = arith.mulf %74, %79 : vector<1x128xf32>
    %cst_40 = arith.constant 1.000000e+00 : f32
    %81 = vector.broadcast %cst_40 : f32 to vector<1x128xf32>
    %82 = arith.mulf %70, %81 : vector<1x128xf32>
    %cst_41 = arith.constant 1.000000e+00 : f32
    %83 = vector.broadcast %cst_41 : f32 to vector<1x128xf32>
    %84 = arith.mulf %72, %83 : vector<1x128xf32>
    %cst_42 = arith.constant -1.000000e+00 : f32
    %85 = vector.broadcast %cst_42 : f32 to vector<1x128xf32>
    %86 = arith.mulf %74, %85 : vector<1x128xf32>
    %cst_43 = arith.constant 1.000000e+00 : f32
    %87 = vector.broadcast %cst_43 : f32 to vector<1x128xf32>
    %88 = arith.mulf %70, %87 : vector<1x128xf32>
    %cst_44 = arith.constant -1.000000e+00 : f32
    %89 = vector.broadcast %cst_44 : f32 to vector<1x128xf32>
    %90 = arith.mulf %72, %89 : vector<1x128xf32>
    %cst_45 = arith.constant 1.000000e+00 : f32
    %91 = vector.broadcast %cst_45 : f32 to vector<1x128xf32>
    %92 = arith.mulf %74, %91 : vector<1x128xf32>
    %cst_46 = arith.constant 1.000000e+00 : f32
    %93 = vector.broadcast %cst_46 : f32 to vector<1x128xf32>
    %94 = arith.mulf %70, %93 : vector<1x128xf32>
    %cst_47 = arith.constant -1.000000e+00 : f32
    %95 = vector.broadcast %cst_47 : f32 to vector<1x128xf32>
    %96 = arith.mulf %72, %95 : vector<1x128xf32>
    %cst_48 = arith.constant -1.000000e+00 : f32
    %97 = vector.broadcast %cst_48 : f32 to vector<1x128xf32>
    %98 = arith.mulf %74, %97 : vector<1x128xf32>
    %99 = vector.broadcast %76 : vector<1x128xf32> to vector<8x128xf32>
    %100 = arith.mulf %52, %99 : vector<8x128xf32>
    %101 = vector.broadcast %78 : vector<1x128xf32> to vector<8x128xf32>
    %102 = arith.mulf %54, %101 : vector<8x128xf32>
    %103 = arith.addf %100, %102 : vector<8x128xf32>
    %104 = vector.broadcast %80 : vector<1x128xf32> to vector<8x128xf32>
    %105 = arith.mulf %56, %104 : vector<8x128xf32>
    %106 = arith.addf %103, %105 : vector<8x128xf32>
    %107 = vector.broadcast %76 : vector<1x128xf32> to vector<8x128xf32>
    %108 = arith.mulf %58, %107 : vector<8x128xf32>
    %109 = vector.broadcast %78 : vector<1x128xf32> to vector<8x128xf32>
    %110 = arith.mulf %60, %109 : vector<8x128xf32>
    %111 = arith.addf %108, %110 : vector<8x128xf32>
    %112 = vector.broadcast %80 : vector<1x128xf32> to vector<8x128xf32>
    %113 = arith.mulf %62, %112 : vector<8x128xf32>
    %114 = arith.addf %111, %113 : vector<8x128xf32>
    %115 = vector.broadcast %76 : vector<1x128xf32> to vector<8x128xf32>
    %116 = arith.mulf %64, %115 : vector<8x128xf32>
    %117 = vector.broadcast %78 : vector<1x128xf32> to vector<8x128xf32>
    %118 = arith.mulf %66, %117 : vector<8x128xf32>
    %119 = arith.addf %116, %118 : vector<8x128xf32>
    %120 = vector.broadcast %80 : vector<1x128xf32> to vector<8x128xf32>
    %121 = arith.mulf %68, %120 : vector<8x128xf32>
    %122 = arith.addf %119, %121 : vector<8x128xf32>
    %123 = vector.broadcast %82 : vector<1x128xf32> to vector<8x128xf32>
    %124 = arith.mulf %52, %123 : vector<8x128xf32>
    %125 = vector.broadcast %84 : vector<1x128xf32> to vector<8x128xf32>
    %126 = arith.mulf %54, %125 : vector<8x128xf32>
    %127 = arith.addf %124, %126 : vector<8x128xf32>
    %128 = vector.broadcast %86 : vector<1x128xf32> to vector<8x128xf32>
    %129 = arith.mulf %56, %128 : vector<8x128xf32>
    %130 = arith.addf %127, %129 : vector<8x128xf32>
    %131 = vector.broadcast %82 : vector<1x128xf32> to vector<8x128xf32>
    %132 = arith.mulf %58, %131 : vector<8x128xf32>
    %133 = vector.broadcast %84 : vector<1x128xf32> to vector<8x128xf32>
    %134 = arith.mulf %60, %133 : vector<8x128xf32>
    %135 = arith.addf %132, %134 : vector<8x128xf32>
    %136 = vector.broadcast %86 : vector<1x128xf32> to vector<8x128xf32>
    %137 = arith.mulf %62, %136 : vector<8x128xf32>
    %138 = arith.addf %135, %137 : vector<8x128xf32>
    %139 = vector.broadcast %82 : vector<1x128xf32> to vector<8x128xf32>
    %140 = arith.mulf %64, %139 : vector<8x128xf32>
    %141 = vector.broadcast %84 : vector<1x128xf32> to vector<8x128xf32>
    %142 = arith.mulf %66, %141 : vector<8x128xf32>
    %143 = arith.addf %140, %142 : vector<8x128xf32>
    %144 = vector.broadcast %86 : vector<1x128xf32> to vector<8x128xf32>
    %145 = arith.mulf %68, %144 : vector<8x128xf32>
    %146 = arith.addf %143, %145 : vector<8x128xf32>
    %147 = vector.broadcast %88 : vector<1x128xf32> to vector<8x128xf32>
    %148 = arith.mulf %52, %147 : vector<8x128xf32>
    %149 = vector.broadcast %90 : vector<1x128xf32> to vector<8x128xf32>
    %150 = arith.mulf %54, %149 : vector<8x128xf32>
    %151 = arith.addf %148, %150 : vector<8x128xf32>
    %152 = vector.broadcast %92 : vector<1x128xf32> to vector<8x128xf32>
    %153 = arith.mulf %56, %152 : vector<8x128xf32>
    %154 = arith.addf %151, %153 : vector<8x128xf32>
    %155 = vector.broadcast %88 : vector<1x128xf32> to vector<8x128xf32>
    %156 = arith.mulf %58, %155 : vector<8x128xf32>
    %157 = vector.broadcast %90 : vector<1x128xf32> to vector<8x128xf32>
    %158 = arith.mulf %60, %157 : vector<8x128xf32>
    %159 = arith.addf %156, %158 : vector<8x128xf32>
    %160 = vector.broadcast %92 : vector<1x128xf32> to vector<8x128xf32>
    %161 = arith.mulf %62, %160 : vector<8x128xf32>
    %162 = arith.addf %159, %161 : vector<8x128xf32>
    %163 = vector.broadcast %88 : vector<1x128xf32> to vector<8x128xf32>
    %164 = arith.mulf %64, %163 : vector<8x128xf32>
    %165 = vector.broadcast %90 : vector<1x128xf32> to vector<8x128xf32>
    %166 = arith.mulf %66, %165 : vector<8x128xf32>
    %167 = arith.addf %164, %166 : vector<8x128xf32>
    %168 = vector.broadcast %92 : vector<1x128xf32> to vector<8x128xf32>
    %169 = arith.mulf %68, %168 : vector<8x128xf32>
    %170 = arith.addf %167, %169 : vector<8x128xf32>
    %171 = vector.broadcast %94 : vector<1x128xf32> to vector<8x128xf32>
    %172 = arith.mulf %52, %171 : vector<8x128xf32>
    %173 = vector.broadcast %96 : vector<1x128xf32> to vector<8x128xf32>
    %174 = arith.mulf %54, %173 : vector<8x128xf32>
    %175 = arith.addf %172, %174 : vector<8x128xf32>
    %176 = vector.broadcast %98 : vector<1x128xf32> to vector<8x128xf32>
    %177 = arith.mulf %56, %176 : vector<8x128xf32>
    %178 = arith.addf %175, %177 : vector<8x128xf32>
    %179 = vector.broadcast %94 : vector<1x128xf32> to vector<8x128xf32>
    %180 = arith.mulf %58, %179 : vector<8x128xf32>
    %181 = vector.broadcast %96 : vector<1x128xf32> to vector<8x128xf32>
    %182 = arith.mulf %60, %181 : vector<8x128xf32>
    %183 = arith.addf %180, %182 : vector<8x128xf32>
    %184 = vector.broadcast %98 : vector<1x128xf32> to vector<8x128xf32>
    %185 = arith.mulf %62, %184 : vector<8x128xf32>
    %186 = arith.addf %183, %185 : vector<8x128xf32>
    %187 = vector.broadcast %94 : vector<1x128xf32> to vector<8x128xf32>
    %188 = arith.mulf %64, %187 : vector<8x128xf32>
    %189 = vector.broadcast %96 : vector<1x128xf32> to vector<8x128xf32>
    %190 = arith.mulf %66, %189 : vector<8x128xf32>
    %191 = arith.addf %188, %190 : vector<8x128xf32>
    %192 = vector.broadcast %98 : vector<1x128xf32> to vector<8x128xf32>
    %193 = arith.mulf %68, %192 : vector<8x128xf32>
    %194 = arith.addf %191, %193 : vector<8x128xf32>
    %cst_49 = arith.constant 1.000000e+00 : f32
    %195 = vector.broadcast %cst_49 : f32 to vector<1x128xf32>
    %196 = arith.mulf %195, %76 : vector<1x128xf32>
    %cst_50 = arith.constant 1.000000e+00 : f32
    %197 = vector.broadcast %cst_50 : f32 to vector<1x128xf32>
    %198 = arith.mulf %197, %78 : vector<1x128xf32>
    %cst_51 = arith.constant 1.000000e+00 : f32
    %199 = vector.broadcast %cst_51 : f32 to vector<1x128xf32>
    %200 = arith.mulf %199, %80 : vector<1x128xf32>
    %201 = arith.mulf %17, %196 : vector<1x128xf32>
    %202 = arith.mulf %39, %198 : vector<1x128xf32>
    %203 = arith.addf %201, %202 : vector<1x128xf32>
    %204 = arith.mulf %44, %200 : vector<1x128xf32>
    %205 = arith.addf %203, %204 : vector<1x128xf32>
    %206 = arith.mulf %18, %196 : vector<1x128xf32>
    %207 = arith.mulf %40, %198 : vector<1x128xf32>
    %208 = arith.addf %206, %207 : vector<1x128xf32>
    %209 = arith.mulf %47, %200 : vector<1x128xf32>
    %210 = arith.addf %208, %209 : vector<1x128xf32>
    %211 = arith.mulf %19, %196 : vector<1x128xf32>
    %212 = arith.mulf %41, %198 : vector<1x128xf32>
    %213 = arith.addf %211, %212 : vector<1x128xf32>
    %214 = arith.mulf %50, %200 : vector<1x128xf32>
    %215 = arith.addf %213, %214 : vector<1x128xf32>
    %216 = vector.broadcast %205 : vector<1x128xf32> to vector<8x128xf32>
    %217 = arith.subf %216, %106 : vector<8x128xf32>
    %218 = vector.broadcast %210 : vector<1x128xf32> to vector<8x128xf32>
    %219 = arith.subf %218, %114 : vector<8x128xf32>
    %220 = vector.broadcast %215 : vector<1x128xf32> to vector<8x128xf32>
    %221 = arith.subf %220, %122 : vector<8x128xf32>
    %222 = arith.mulf %217, %217 : vector<8x128xf32>
    %223 = arith.mulf %219, %219 : vector<8x128xf32>
    %224 = arith.addf %222, %223 : vector<8x128xf32>
    %225 = arith.mulf %221, %221 : vector<8x128xf32>
    %226 = arith.addf %224, %225 : vector<8x128xf32>
    %227 = math.sqrt %226 : vector<8x128xf32>
    %cst_52 = arith.constant 1.000000e+00 : f32
    %228 = vector.broadcast %cst_52 : f32 to vector<1x128xf32>
    %229 = arith.mulf %228, %82 : vector<1x128xf32>
    %cst_53 = arith.constant 1.000000e+00 : f32
    %230 = vector.broadcast %cst_53 : f32 to vector<1x128xf32>
    %231 = arith.mulf %230, %84 : vector<1x128xf32>
    %cst_54 = arith.constant 1.000000e+00 : f32
    %232 = vector.broadcast %cst_54 : f32 to vector<1x128xf32>
    %233 = arith.mulf %232, %86 : vector<1x128xf32>
    %234 = arith.mulf %17, %229 : vector<1x128xf32>
    %235 = arith.mulf %39, %231 : vector<1x128xf32>
    %236 = arith.addf %234, %235 : vector<1x128xf32>
    %237 = arith.mulf %44, %233 : vector<1x128xf32>
    %238 = arith.addf %236, %237 : vector<1x128xf32>
    %239 = arith.mulf %18, %229 : vector<1x128xf32>
    %240 = arith.mulf %40, %231 : vector<1x128xf32>
    %241 = arith.addf %239, %240 : vector<1x128xf32>
    %242 = arith.mulf %47, %233 : vector<1x128xf32>
    %243 = arith.addf %241, %242 : vector<1x128xf32>
    %244 = arith.mulf %19, %229 : vector<1x128xf32>
    %245 = arith.mulf %41, %231 : vector<1x128xf32>
    %246 = arith.addf %244, %245 : vector<1x128xf32>
    %247 = arith.mulf %50, %233 : vector<1x128xf32>
    %248 = arith.addf %246, %247 : vector<1x128xf32>
    %249 = vector.broadcast %238 : vector<1x128xf32> to vector<8x128xf32>
    %250 = arith.subf %249, %130 : vector<8x128xf32>
    %251 = vector.broadcast %243 : vector<1x128xf32> to vector<8x128xf32>
    %252 = arith.subf %251, %138 : vector<8x128xf32>
    %253 = vector.broadcast %248 : vector<1x128xf32> to vector<8x128xf32>
    %254 = arith.subf %253, %146 : vector<8x128xf32>
    %255 = arith.mulf %250, %250 : vector<8x128xf32>
    %256 = arith.mulf %252, %252 : vector<8x128xf32>
    %257 = arith.addf %255, %256 : vector<8x128xf32>
    %258 = arith.mulf %254, %254 : vector<8x128xf32>
    %259 = arith.addf %257, %258 : vector<8x128xf32>
    %260 = math.sqrt %259 : vector<8x128xf32>
    %261 = arith.addf %227, %260 : vector<8x128xf32>
    %cst_55 = arith.constant 1.000000e+00 : f32
    %262 = vector.broadcast %cst_55 : f32 to vector<1x128xf32>
    %263 = arith.mulf %262, %88 : vector<1x128xf32>
    %cst_56 = arith.constant 1.000000e+00 : f32
    %264 = vector.broadcast %cst_56 : f32 to vector<1x128xf32>
    %265 = arith.mulf %264, %90 : vector<1x128xf32>
    %cst_57 = arith.constant 1.000000e+00 : f32
    %266 = vector.broadcast %cst_57 : f32 to vector<1x128xf32>
    %267 = arith.mulf %266, %92 : vector<1x128xf32>
    %268 = arith.mulf %17, %263 : vector<1x128xf32>
    %269 = arith.mulf %39, %265 : vector<1x128xf32>
    %270 = arith.addf %268, %269 : vector<1x128xf32>
    %271 = arith.mulf %44, %267 : vector<1x128xf32>
    %272 = arith.addf %270, %271 : vector<1x128xf32>
    %273 = arith.mulf %18, %263 : vector<1x128xf32>
    %274 = arith.mulf %40, %265 : vector<1x128xf32>
    %275 = arith.addf %273, %274 : vector<1x128xf32>
    %276 = arith.mulf %47, %267 : vector<1x128xf32>
    %277 = arith.addf %275, %276 : vector<1x128xf32>
    %278 = arith.mulf %19, %263 : vector<1x128xf32>
    %279 = arith.mulf %41, %265 : vector<1x128xf32>
    %280 = arith.addf %278, %279 : vector<1x128xf32>
    %281 = arith.mulf %50, %267 : vector<1x128xf32>
    %282 = arith.addf %280, %281 : vector<1x128xf32>
    %283 = vector.broadcast %272 : vector<1x128xf32> to vector<8x128xf32>
    %284 = arith.subf %283, %154 : vector<8x128xf32>
    %285 = vector.broadcast %277 : vector<1x128xf32> to vector<8x128xf32>
    %286 = arith.subf %285, %162 : vector<8x128xf32>
    %287 = vector.broadcast %282 : vector<1x128xf32> to vector<8x128xf32>
    %288 = arith.subf %287, %170 : vector<8x128xf32>
    %289 = arith.mulf %284, %284 : vector<8x128xf32>
    %290 = arith.mulf %286, %286 : vector<8x128xf32>
    %291 = arith.addf %289, %290 : vector<8x128xf32>
    %292 = arith.mulf %288, %288 : vector<8x128xf32>
    %293 = arith.addf %291, %292 : vector<8x128xf32>
    %294 = math.sqrt %293 : vector<8x128xf32>
    %295 = arith.addf %261, %294 : vector<8x128xf32>
    %cst_58 = arith.constant 1.000000e+00 : f32
    %296 = vector.broadcast %cst_58 : f32 to vector<1x128xf32>
    %297 = arith.mulf %296, %94 : vector<1x128xf32>
    %cst_59 = arith.constant 1.000000e+00 : f32
    %298 = vector.broadcast %cst_59 : f32 to vector<1x128xf32>
    %299 = arith.mulf %298, %96 : vector<1x128xf32>
    %cst_60 = arith.constant 1.000000e+00 : f32
    %300 = vector.broadcast %cst_60 : f32 to vector<1x128xf32>
    %301 = arith.mulf %300, %98 : vector<1x128xf32>
    %302 = arith.mulf %17, %297 : vector<1x128xf32>
    %303 = arith.mulf %39, %299 : vector<1x128xf32>
    %304 = arith.addf %302, %303 : vector<1x128xf32>
    %305 = arith.mulf %44, %301 : vector<1x128xf32>
    %306 = arith.addf %304, %305 : vector<1x128xf32>
    %307 = arith.mulf %18, %297 : vector<1x128xf32>
    %308 = arith.mulf %40, %299 : vector<1x128xf32>
    %309 = arith.addf %307, %308 : vector<1x128xf32>
    %310 = arith.mulf %47, %301 : vector<1x128xf32>
    %311 = arith.addf %309, %310 : vector<1x128xf32>
    %312 = arith.mulf %19, %297 : vector<1x128xf32>
    %313 = arith.mulf %41, %299 : vector<1x128xf32>
    %314 = arith.addf %312, %313 : vector<1x128xf32>
    %315 = arith.mulf %50, %301 : vector<1x128xf32>
    %316 = arith.addf %314, %315 : vector<1x128xf32>
    %317 = vector.broadcast %306 : vector<1x128xf32> to vector<8x128xf32>
    %318 = arith.subf %317, %178 : vector<8x128xf32>
    %319 = vector.broadcast %311 : vector<1x128xf32> to vector<8x128xf32>
    %320 = arith.subf %319, %186 : vector<8x128xf32>
    %321 = vector.broadcast %316 : vector<1x128xf32> to vector<8x128xf32>
    %322 = arith.subf %321, %194 : vector<8x128xf32>
    %323 = arith.mulf %318, %318 : vector<8x128xf32>
    %324 = arith.mulf %320, %320 : vector<8x128xf32>
    %325 = arith.addf %323, %324 : vector<8x128xf32>
    %326 = arith.mulf %322, %322 : vector<8x128xf32>
    %327 = arith.addf %325, %326 : vector<8x128xf32>
    %328 = math.sqrt %327 : vector<8x128xf32>
    %329 = arith.addf %295, %328 : vector<8x128xf32>
    %cst_61 = arith.constant 2.500000e-01 : f32
    %330 = vector.broadcast %cst_61 : f32 to vector<8x128xf32>
    %331 = arith.mulf %329, %330 : vector<8x128xf32>
    %cst_62 = arith.constant 1.000000e+00 : f32
    %332 = vector.broadcast %cst_62 : f32 to vector<1x128xf32>
    %333 = arith.mulf %332, %76 : vector<1x128xf32>
    %cst_63 = arith.constant -1.000000e+00 : f32
    %334 = vector.broadcast %cst_63 : f32 to vector<1x128xf32>
    %335 = arith.mulf %334, %78 : vector<1x128xf32>
    %cst_64 = arith.constant -1.000000e+00 : f32
    %336 = vector.broadcast %cst_64 : f32 to vector<1x128xf32>
    %337 = arith.mulf %336, %80 : vector<1x128xf32>
    %338 = arith.mulf %17, %333 : vector<1x128xf32>
    %339 = arith.mulf %39, %335 : vector<1x128xf32>
    %340 = arith.addf %338, %339 : vector<1x128xf32>
    %341 = arith.mulf %44, %337 : vector<1x128xf32>
    %342 = arith.addf %340, %341 : vector<1x128xf32>
    %343 = arith.mulf %18, %333 : vector<1x128xf32>
    %344 = arith.mulf %40, %335 : vector<1x128xf32>
    %345 = arith.addf %343, %344 : vector<1x128xf32>
    %346 = arith.mulf %47, %337 : vector<1x128xf32>
    %347 = arith.addf %345, %346 : vector<1x128xf32>
    %348 = arith.mulf %19, %333 : vector<1x128xf32>
    %349 = arith.mulf %41, %335 : vector<1x128xf32>
    %350 = arith.addf %348, %349 : vector<1x128xf32>
    %351 = arith.mulf %50, %337 : vector<1x128xf32>
    %352 = arith.addf %350, %351 : vector<1x128xf32>
    %353 = vector.broadcast %342 : vector<1x128xf32> to vector<8x128xf32>
    %354 = arith.subf %353, %106 : vector<8x128xf32>
    %355 = vector.broadcast %347 : vector<1x128xf32> to vector<8x128xf32>
    %356 = arith.subf %355, %114 : vector<8x128xf32>
    %357 = vector.broadcast %352 : vector<1x128xf32> to vector<8x128xf32>
    %358 = arith.subf %357, %122 : vector<8x128xf32>
    %359 = arith.mulf %354, %354 : vector<8x128xf32>
    %360 = arith.mulf %356, %356 : vector<8x128xf32>
    %361 = arith.addf %359, %360 : vector<8x128xf32>
    %362 = arith.mulf %358, %358 : vector<8x128xf32>
    %363 = arith.addf %361, %362 : vector<8x128xf32>
    %364 = math.sqrt %363 : vector<8x128xf32>
    %cst_65 = arith.constant 1.000000e+00 : f32
    %365 = vector.broadcast %cst_65 : f32 to vector<1x128xf32>
    %366 = arith.mulf %365, %82 : vector<1x128xf32>
    %cst_66 = arith.constant -1.000000e+00 : f32
    %367 = vector.broadcast %cst_66 : f32 to vector<1x128xf32>
    %368 = arith.mulf %367, %84 : vector<1x128xf32>
    %cst_67 = arith.constant -1.000000e+00 : f32
    %369 = vector.broadcast %cst_67 : f32 to vector<1x128xf32>
    %370 = arith.mulf %369, %86 : vector<1x128xf32>
    %371 = arith.mulf %17, %366 : vector<1x128xf32>
    %372 = arith.mulf %39, %368 : vector<1x128xf32>
    %373 = arith.addf %371, %372 : vector<1x128xf32>
    %374 = arith.mulf %44, %370 : vector<1x128xf32>
    %375 = arith.addf %373, %374 : vector<1x128xf32>
    %376 = arith.mulf %18, %366 : vector<1x128xf32>
    %377 = arith.mulf %40, %368 : vector<1x128xf32>
    %378 = arith.addf %376, %377 : vector<1x128xf32>
    %379 = arith.mulf %47, %370 : vector<1x128xf32>
    %380 = arith.addf %378, %379 : vector<1x128xf32>
    %381 = arith.mulf %19, %366 : vector<1x128xf32>
    %382 = arith.mulf %41, %368 : vector<1x128xf32>
    %383 = arith.addf %381, %382 : vector<1x128xf32>
    %384 = arith.mulf %50, %370 : vector<1x128xf32>
    %385 = arith.addf %383, %384 : vector<1x128xf32>
    %386 = vector.broadcast %375 : vector<1x128xf32> to vector<8x128xf32>
    %387 = arith.subf %386, %130 : vector<8x128xf32>
    %388 = vector.broadcast %380 : vector<1x128xf32> to vector<8x128xf32>
    %389 = arith.subf %388, %138 : vector<8x128xf32>
    %390 = vector.broadcast %385 : vector<1x128xf32> to vector<8x128xf32>
    %391 = arith.subf %390, %146 : vector<8x128xf32>
    %392 = arith.mulf %387, %387 : vector<8x128xf32>
    %393 = arith.mulf %389, %389 : vector<8x128xf32>
    %394 = arith.addf %392, %393 : vector<8x128xf32>
    %395 = arith.mulf %391, %391 : vector<8x128xf32>
    %396 = arith.addf %394, %395 : vector<8x128xf32>
    %397 = math.sqrt %396 : vector<8x128xf32>
    %398 = arith.addf %364, %397 : vector<8x128xf32>
    %cst_68 = arith.constant 1.000000e+00 : f32
    %399 = vector.broadcast %cst_68 : f32 to vector<1x128xf32>
    %400 = arith.mulf %399, %88 : vector<1x128xf32>
    %cst_69 = arith.constant -1.000000e+00 : f32
    %401 = vector.broadcast %cst_69 : f32 to vector<1x128xf32>
    %402 = arith.mulf %401, %90 : vector<1x128xf32>
    %cst_70 = arith.constant -1.000000e+00 : f32
    %403 = vector.broadcast %cst_70 : f32 to vector<1x128xf32>
    %404 = arith.mulf %403, %92 : vector<1x128xf32>
    %405 = arith.mulf %17, %400 : vector<1x128xf32>
    %406 = arith.mulf %39, %402 : vector<1x128xf32>
    %407 = arith.addf %405, %406 : vector<1x128xf32>
    %408 = arith.mulf %44, %404 : vector<1x128xf32>
    %409 = arith.addf %407, %408 : vector<1x128xf32>
    %410 = arith.mulf %18, %400 : vector<1x128xf32>
    %411 = arith.mulf %40, %402 : vector<1x128xf32>
    %412 = arith.addf %410, %411 : vector<1x128xf32>
    %413 = arith.mulf %47, %404 : vector<1x128xf32>
    %414 = arith.addf %412, %413 : vector<1x128xf32>
    %415 = arith.mulf %19, %400 : vector<1x128xf32>
    %416 = arith.mulf %41, %402 : vector<1x128xf32>
    %417 = arith.addf %415, %416 : vector<1x128xf32>
    %418 = arith.mulf %50, %404 : vector<1x128xf32>
    %419 = arith.addf %417, %418 : vector<1x128xf32>
    %420 = vector.broadcast %409 : vector<1x128xf32> to vector<8x128xf32>
    %421 = arith.subf %420, %154 : vector<8x128xf32>
    %422 = vector.broadcast %414 : vector<1x128xf32> to vector<8x128xf32>
    %423 = arith.subf %422, %162 : vector<8x128xf32>
    %424 = vector.broadcast %419 : vector<1x128xf32> to vector<8x128xf32>
    %425 = arith.subf %424, %170 : vector<8x128xf32>
    %426 = arith.mulf %421, %421 : vector<8x128xf32>
    %427 = arith.mulf %423, %423 : vector<8x128xf32>
    %428 = arith.addf %426, %427 : vector<8x128xf32>
    %429 = arith.mulf %425, %425 : vector<8x128xf32>
    %430 = arith.addf %428, %429 : vector<8x128xf32>
    %431 = math.sqrt %430 : vector<8x128xf32>
    %432 = arith.addf %398, %431 : vector<8x128xf32>
    %cst_71 = arith.constant 1.000000e+00 : f32
    %433 = vector.broadcast %cst_71 : f32 to vector<1x128xf32>
    %434 = arith.mulf %433, %94 : vector<1x128xf32>
    %cst_72 = arith.constant -1.000000e+00 : f32
    %435 = vector.broadcast %cst_72 : f32 to vector<1x128xf32>
    %436 = arith.mulf %435, %96 : vector<1x128xf32>
    %cst_73 = arith.constant -1.000000e+00 : f32
    %437 = vector.broadcast %cst_73 : f32 to vector<1x128xf32>
    %438 = arith.mulf %437, %98 : vector<1x128xf32>
    %439 = arith.mulf %17, %434 : vector<1x128xf32>
    %440 = arith.mulf %39, %436 : vector<1x128xf32>
    %441 = arith.addf %439, %440 : vector<1x128xf32>
    %442 = arith.mulf %44, %438 : vector<1x128xf32>
    %443 = arith.addf %441, %442 : vector<1x128xf32>
    %444 = arith.mulf %18, %434 : vector<1x128xf32>
    %445 = arith.mulf %40, %436 : vector<1x128xf32>
    %446 = arith.addf %444, %445 : vector<1x128xf32>
    %447 = arith.mulf %47, %438 : vector<1x128xf32>
    %448 = arith.addf %446, %447 : vector<1x128xf32>
    %449 = arith.mulf %19, %434 : vector<1x128xf32>
    %450 = arith.mulf %41, %436 : vector<1x128xf32>
    %451 = arith.addf %449, %450 : vector<1x128xf32>
    %452 = arith.mulf %50, %438 : vector<1x128xf32>
    %453 = arith.addf %451, %452 : vector<1x128xf32>
    %454 = vector.broadcast %443 : vector<1x128xf32> to vector<8x128xf32>
    %455 = arith.subf %454, %178 : vector<8x128xf32>
    %456 = vector.broadcast %448 : vector<1x128xf32> to vector<8x128xf32>
    %457 = arith.subf %456, %186 : vector<8x128xf32>
    %458 = vector.broadcast %453 : vector<1x128xf32> to vector<8x128xf32>
    %459 = arith.subf %458, %194 : vector<8x128xf32>
    %460 = arith.mulf %455, %455 : vector<8x128xf32>
    %461 = arith.mulf %457, %457 : vector<8x128xf32>
    %462 = arith.addf %460, %461 : vector<8x128xf32>
    %463 = arith.mulf %459, %459 : vector<8x128xf32>
    %464 = arith.addf %462, %463 : vector<8x128xf32>
    %465 = math.sqrt %464 : vector<8x128xf32>
    %466 = arith.addf %432, %465 : vector<8x128xf32>
    %cst_74 = arith.constant 2.500000e-01 : f32
    %467 = vector.broadcast %cst_74 : f32 to vector<8x128xf32>
    %468 = arith.mulf %466, %467 : vector<8x128xf32>
    %469 = arith.minimumf %331, %468 : vector<8x128xf32>
    %cst_75 = arith.constant -1.000000e+00 : f32
    %470 = vector.broadcast %cst_75 : f32 to vector<1x128xf32>
    %471 = arith.mulf %470, %76 : vector<1x128xf32>
    %cst_76 = arith.constant 1.000000e+00 : f32
    %472 = vector.broadcast %cst_76 : f32 to vector<1x128xf32>
    %473 = arith.mulf %472, %78 : vector<1x128xf32>
    %cst_77 = arith.constant -1.000000e+00 : f32
    %474 = vector.broadcast %cst_77 : f32 to vector<1x128xf32>
    %475 = arith.mulf %474, %80 : vector<1x128xf32>
    %476 = arith.mulf %17, %471 : vector<1x128xf32>
    %477 = arith.mulf %39, %473 : vector<1x128xf32>
    %478 = arith.addf %476, %477 : vector<1x128xf32>
    %479 = arith.mulf %44, %475 : vector<1x128xf32>
    %480 = arith.addf %478, %479 : vector<1x128xf32>
    %481 = arith.mulf %18, %471 : vector<1x128xf32>
    %482 = arith.mulf %40, %473 : vector<1x128xf32>
    %483 = arith.addf %481, %482 : vector<1x128xf32>
    %484 = arith.mulf %47, %475 : vector<1x128xf32>
    %485 = arith.addf %483, %484 : vector<1x128xf32>
    %486 = arith.mulf %19, %471 : vector<1x128xf32>
    %487 = arith.mulf %41, %473 : vector<1x128xf32>
    %488 = arith.addf %486, %487 : vector<1x128xf32>
    %489 = arith.mulf %50, %475 : vector<1x128xf32>
    %490 = arith.addf %488, %489 : vector<1x128xf32>
    %491 = vector.broadcast %480 : vector<1x128xf32> to vector<8x128xf32>
    %492 = arith.subf %491, %106 : vector<8x128xf32>
    %493 = vector.broadcast %485 : vector<1x128xf32> to vector<8x128xf32>
    %494 = arith.subf %493, %114 : vector<8x128xf32>
    %495 = vector.broadcast %490 : vector<1x128xf32> to vector<8x128xf32>
    %496 = arith.subf %495, %122 : vector<8x128xf32>
    %497 = arith.mulf %492, %492 : vector<8x128xf32>
    %498 = arith.mulf %494, %494 : vector<8x128xf32>
    %499 = arith.addf %497, %498 : vector<8x128xf32>
    %500 = arith.mulf %496, %496 : vector<8x128xf32>
    %501 = arith.addf %499, %500 : vector<8x128xf32>
    %502 = math.sqrt %501 : vector<8x128xf32>
    %cst_78 = arith.constant -1.000000e+00 : f32
    %503 = vector.broadcast %cst_78 : f32 to vector<1x128xf32>
    %504 = arith.mulf %503, %82 : vector<1x128xf32>
    %cst_79 = arith.constant 1.000000e+00 : f32
    %505 = vector.broadcast %cst_79 : f32 to vector<1x128xf32>
    %506 = arith.mulf %505, %84 : vector<1x128xf32>
    %cst_80 = arith.constant -1.000000e+00 : f32
    %507 = vector.broadcast %cst_80 : f32 to vector<1x128xf32>
    %508 = arith.mulf %507, %86 : vector<1x128xf32>
    %509 = arith.mulf %17, %504 : vector<1x128xf32>
    %510 = arith.mulf %39, %506 : vector<1x128xf32>
    %511 = arith.addf %509, %510 : vector<1x128xf32>
    %512 = arith.mulf %44, %508 : vector<1x128xf32>
    %513 = arith.addf %511, %512 : vector<1x128xf32>
    %514 = arith.mulf %18, %504 : vector<1x128xf32>
    %515 = arith.mulf %40, %506 : vector<1x128xf32>
    %516 = arith.addf %514, %515 : vector<1x128xf32>
    %517 = arith.mulf %47, %508 : vector<1x128xf32>
    %518 = arith.addf %516, %517 : vector<1x128xf32>
    %519 = arith.mulf %19, %504 : vector<1x128xf32>
    %520 = arith.mulf %41, %506 : vector<1x128xf32>
    %521 = arith.addf %519, %520 : vector<1x128xf32>
    %522 = arith.mulf %50, %508 : vector<1x128xf32>
    %523 = arith.addf %521, %522 : vector<1x128xf32>
    %524 = vector.broadcast %513 : vector<1x128xf32> to vector<8x128xf32>
    %525 = arith.subf %524, %130 : vector<8x128xf32>
    %526 = vector.broadcast %518 : vector<1x128xf32> to vector<8x128xf32>
    %527 = arith.subf %526, %138 : vector<8x128xf32>
    %528 = vector.broadcast %523 : vector<1x128xf32> to vector<8x128xf32>
    %529 = arith.subf %528, %146 : vector<8x128xf32>
    %530 = arith.mulf %525, %525 : vector<8x128xf32>
    %531 = arith.mulf %527, %527 : vector<8x128xf32>
    %532 = arith.addf %530, %531 : vector<8x128xf32>
    %533 = arith.mulf %529, %529 : vector<8x128xf32>
    %534 = arith.addf %532, %533 : vector<8x128xf32>
    %535 = math.sqrt %534 : vector<8x128xf32>
    %536 = arith.addf %502, %535 : vector<8x128xf32>
    %cst_81 = arith.constant -1.000000e+00 : f32
    %537 = vector.broadcast %cst_81 : f32 to vector<1x128xf32>
    %538 = arith.mulf %537, %88 : vector<1x128xf32>
    %cst_82 = arith.constant 1.000000e+00 : f32
    %539 = vector.broadcast %cst_82 : f32 to vector<1x128xf32>
    %540 = arith.mulf %539, %90 : vector<1x128xf32>
    %cst_83 = arith.constant -1.000000e+00 : f32
    %541 = vector.broadcast %cst_83 : f32 to vector<1x128xf32>
    %542 = arith.mulf %541, %92 : vector<1x128xf32>
    %543 = arith.mulf %17, %538 : vector<1x128xf32>
    %544 = arith.mulf %39, %540 : vector<1x128xf32>
    %545 = arith.addf %543, %544 : vector<1x128xf32>
    %546 = arith.mulf %44, %542 : vector<1x128xf32>
    %547 = arith.addf %545, %546 : vector<1x128xf32>
    %548 = arith.mulf %18, %538 : vector<1x128xf32>
    %549 = arith.mulf %40, %540 : vector<1x128xf32>
    %550 = arith.addf %548, %549 : vector<1x128xf32>
    %551 = arith.mulf %47, %542 : vector<1x128xf32>
    %552 = arith.addf %550, %551 : vector<1x128xf32>
    %553 = arith.mulf %19, %538 : vector<1x128xf32>
    %554 = arith.mulf %41, %540 : vector<1x128xf32>
    %555 = arith.addf %553, %554 : vector<1x128xf32>
    %556 = arith.mulf %50, %542 : vector<1x128xf32>
    %557 = arith.addf %555, %556 : vector<1x128xf32>
    %558 = vector.broadcast %547 : vector<1x128xf32> to vector<8x128xf32>
    %559 = arith.subf %558, %154 : vector<8x128xf32>
    %560 = vector.broadcast %552 : vector<1x128xf32> to vector<8x128xf32>
    %561 = arith.subf %560, %162 : vector<8x128xf32>
    %562 = vector.broadcast %557 : vector<1x128xf32> to vector<8x128xf32>
    %563 = arith.subf %562, %170 : vector<8x128xf32>
    %564 = arith.mulf %559, %559 : vector<8x128xf32>
    %565 = arith.mulf %561, %561 : vector<8x128xf32>
    %566 = arith.addf %564, %565 : vector<8x128xf32>
    %567 = arith.mulf %563, %563 : vector<8x128xf32>
    %568 = arith.addf %566, %567 : vector<8x128xf32>
    %569 = math.sqrt %568 : vector<8x128xf32>
    %570 = arith.addf %536, %569 : vector<8x128xf32>
    %cst_84 = arith.constant -1.000000e+00 : f32
    %571 = vector.broadcast %cst_84 : f32 to vector<1x128xf32>
    %572 = arith.mulf %571, %94 : vector<1x128xf32>
    %cst_85 = arith.constant 1.000000e+00 : f32
    %573 = vector.broadcast %cst_85 : f32 to vector<1x128xf32>
    %574 = arith.mulf %573, %96 : vector<1x128xf32>
    %cst_86 = arith.constant -1.000000e+00 : f32
    %575 = vector.broadcast %cst_86 : f32 to vector<1x128xf32>
    %576 = arith.mulf %575, %98 : vector<1x128xf32>
    %577 = arith.mulf %17, %572 : vector<1x128xf32>
    %578 = arith.mulf %39, %574 : vector<1x128xf32>
    %579 = arith.addf %577, %578 : vector<1x128xf32>
    %580 = arith.mulf %44, %576 : vector<1x128xf32>
    %581 = arith.addf %579, %580 : vector<1x128xf32>
    %582 = arith.mulf %18, %572 : vector<1x128xf32>
    %583 = arith.mulf %40, %574 : vector<1x128xf32>
    %584 = arith.addf %582, %583 : vector<1x128xf32>
    %585 = arith.mulf %47, %576 : vector<1x128xf32>
    %586 = arith.addf %584, %585 : vector<1x128xf32>
    %587 = arith.mulf %19, %572 : vector<1x128xf32>
    %588 = arith.mulf %41, %574 : vector<1x128xf32>
    %589 = arith.addf %587, %588 : vector<1x128xf32>
    %590 = arith.mulf %50, %576 : vector<1x128xf32>
    %591 = arith.addf %589, %590 : vector<1x128xf32>
    %592 = vector.broadcast %581 : vector<1x128xf32> to vector<8x128xf32>
    %593 = arith.subf %592, %178 : vector<8x128xf32>
    %594 = vector.broadcast %586 : vector<1x128xf32> to vector<8x128xf32>
    %595 = arith.subf %594, %186 : vector<8x128xf32>
    %596 = vector.broadcast %591 : vector<1x128xf32> to vector<8x128xf32>
    %597 = arith.subf %596, %194 : vector<8x128xf32>
    %598 = arith.mulf %593, %593 : vector<8x128xf32>
    %599 = arith.mulf %595, %595 : vector<8x128xf32>
    %600 = arith.addf %598, %599 : vector<8x128xf32>
    %601 = arith.mulf %597, %597 : vector<8x128xf32>
    %602 = arith.addf %600, %601 : vector<8x128xf32>
    %603 = math.sqrt %602 : vector<8x128xf32>
    %604 = arith.addf %570, %603 : vector<8x128xf32>
    %cst_87 = arith.constant 2.500000e-01 : f32
    %605 = vector.broadcast %cst_87 : f32 to vector<8x128xf32>
    %606 = arith.mulf %604, %605 : vector<8x128xf32>
    %607 = arith.minimumf %469, %606 : vector<8x128xf32>
    %cst_88 = arith.constant -1.000000e+00 : f32
    %608 = vector.broadcast %cst_88 : f32 to vector<1x128xf32>
    %609 = arith.mulf %608, %76 : vector<1x128xf32>
    %cst_89 = arith.constant -1.000000e+00 : f32
    %610 = vector.broadcast %cst_89 : f32 to vector<1x128xf32>
    %611 = arith.mulf %610, %78 : vector<1x128xf32>
    %cst_90 = arith.constant 1.000000e+00 : f32
    %612 = vector.broadcast %cst_90 : f32 to vector<1x128xf32>
    %613 = arith.mulf %612, %80 : vector<1x128xf32>
    %614 = arith.mulf %17, %609 : vector<1x128xf32>
    %615 = arith.mulf %39, %611 : vector<1x128xf32>
    %616 = arith.addf %614, %615 : vector<1x128xf32>
    %617 = arith.mulf %44, %613 : vector<1x128xf32>
    %618 = arith.addf %616, %617 : vector<1x128xf32>
    %619 = arith.mulf %18, %609 : vector<1x128xf32>
    %620 = arith.mulf %40, %611 : vector<1x128xf32>
    %621 = arith.addf %619, %620 : vector<1x128xf32>
    %622 = arith.mulf %47, %613 : vector<1x128xf32>
    %623 = arith.addf %621, %622 : vector<1x128xf32>
    %624 = arith.mulf %19, %609 : vector<1x128xf32>
    %625 = arith.mulf %41, %611 : vector<1x128xf32>
    %626 = arith.addf %624, %625 : vector<1x128xf32>
    %627 = arith.mulf %50, %613 : vector<1x128xf32>
    %628 = arith.addf %626, %627 : vector<1x128xf32>
    %629 = vector.broadcast %618 : vector<1x128xf32> to vector<8x128xf32>
    %630 = arith.subf %629, %106 : vector<8x128xf32>
    %631 = vector.broadcast %623 : vector<1x128xf32> to vector<8x128xf32>
    %632 = arith.subf %631, %114 : vector<8x128xf32>
    %633 = vector.broadcast %628 : vector<1x128xf32> to vector<8x128xf32>
    %634 = arith.subf %633, %122 : vector<8x128xf32>
    %635 = arith.mulf %630, %630 : vector<8x128xf32>
    %636 = arith.mulf %632, %632 : vector<8x128xf32>
    %637 = arith.addf %635, %636 : vector<8x128xf32>
    %638 = arith.mulf %634, %634 : vector<8x128xf32>
    %639 = arith.addf %637, %638 : vector<8x128xf32>
    %640 = math.sqrt %639 : vector<8x128xf32>
    %cst_91 = arith.constant -1.000000e+00 : f32
    %641 = vector.broadcast %cst_91 : f32 to vector<1x128xf32>
    %642 = arith.mulf %641, %82 : vector<1x128xf32>
    %cst_92 = arith.constant -1.000000e+00 : f32
    %643 = vector.broadcast %cst_92 : f32 to vector<1x128xf32>
    %644 = arith.mulf %643, %84 : vector<1x128xf32>
    %cst_93 = arith.constant 1.000000e+00 : f32
    %645 = vector.broadcast %cst_93 : f32 to vector<1x128xf32>
    %646 = arith.mulf %645, %86 : vector<1x128xf32>
    %647 = arith.mulf %17, %642 : vector<1x128xf32>
    %648 = arith.mulf %39, %644 : vector<1x128xf32>
    %649 = arith.addf %647, %648 : vector<1x128xf32>
    %650 = arith.mulf %44, %646 : vector<1x128xf32>
    %651 = arith.addf %649, %650 : vector<1x128xf32>
    %652 = arith.mulf %18, %642 : vector<1x128xf32>
    %653 = arith.mulf %40, %644 : vector<1x128xf32>
    %654 = arith.addf %652, %653 : vector<1x128xf32>
    %655 = arith.mulf %47, %646 : vector<1x128xf32>
    %656 = arith.addf %654, %655 : vector<1x128xf32>
    %657 = arith.mulf %19, %642 : vector<1x128xf32>
    %658 = arith.mulf %41, %644 : vector<1x128xf32>
    %659 = arith.addf %657, %658 : vector<1x128xf32>
    %660 = arith.mulf %50, %646 : vector<1x128xf32>
    %661 = arith.addf %659, %660 : vector<1x128xf32>
    %662 = vector.broadcast %651 : vector<1x128xf32> to vector<8x128xf32>
    %663 = arith.subf %662, %130 : vector<8x128xf32>
    %664 = vector.broadcast %656 : vector<1x128xf32> to vector<8x128xf32>
    %665 = arith.subf %664, %138 : vector<8x128xf32>
    %666 = vector.broadcast %661 : vector<1x128xf32> to vector<8x128xf32>
    %667 = arith.subf %666, %146 : vector<8x128xf32>
    %668 = arith.mulf %663, %663 : vector<8x128xf32>
    %669 = arith.mulf %665, %665 : vector<8x128xf32>
    %670 = arith.addf %668, %669 : vector<8x128xf32>
    %671 = arith.mulf %667, %667 : vector<8x128xf32>
    %672 = arith.addf %670, %671 : vector<8x128xf32>
    %673 = math.sqrt %672 : vector<8x128xf32>
    %674 = arith.addf %640, %673 : vector<8x128xf32>
    %cst_94 = arith.constant -1.000000e+00 : f32
    %675 = vector.broadcast %cst_94 : f32 to vector<1x128xf32>
    %676 = arith.mulf %675, %88 : vector<1x128xf32>
    %cst_95 = arith.constant -1.000000e+00 : f32
    %677 = vector.broadcast %cst_95 : f32 to vector<1x128xf32>
    %678 = arith.mulf %677, %90 : vector<1x128xf32>
    %cst_96 = arith.constant 1.000000e+00 : f32
    %679 = vector.broadcast %cst_96 : f32 to vector<1x128xf32>
    %680 = arith.mulf %679, %92 : vector<1x128xf32>
    %681 = arith.mulf %17, %676 : vector<1x128xf32>
    %682 = arith.mulf %39, %678 : vector<1x128xf32>
    %683 = arith.addf %681, %682 : vector<1x128xf32>
    %684 = arith.mulf %44, %680 : vector<1x128xf32>
    %685 = arith.addf %683, %684 : vector<1x128xf32>
    %686 = arith.mulf %18, %676 : vector<1x128xf32>
    %687 = arith.mulf %40, %678 : vector<1x128xf32>
    %688 = arith.addf %686, %687 : vector<1x128xf32>
    %689 = arith.mulf %47, %680 : vector<1x128xf32>
    %690 = arith.addf %688, %689 : vector<1x128xf32>
    %691 = arith.mulf %19, %676 : vector<1x128xf32>
    %692 = arith.mulf %41, %678 : vector<1x128xf32>
    %693 = arith.addf %691, %692 : vector<1x128xf32>
    %694 = arith.mulf %50, %680 : vector<1x128xf32>
    %695 = arith.addf %693, %694 : vector<1x128xf32>
    %696 = vector.broadcast %685 : vector<1x128xf32> to vector<8x128xf32>
    %697 = arith.subf %696, %154 : vector<8x128xf32>
    %698 = vector.broadcast %690 : vector<1x128xf32> to vector<8x128xf32>
    %699 = arith.subf %698, %162 : vector<8x128xf32>
    %700 = vector.broadcast %695 : vector<1x128xf32> to vector<8x128xf32>
    %701 = arith.subf %700, %170 : vector<8x128xf32>
    %702 = arith.mulf %697, %697 : vector<8x128xf32>
    %703 = arith.mulf %699, %699 : vector<8x128xf32>
    %704 = arith.addf %702, %703 : vector<8x128xf32>
    %705 = arith.mulf %701, %701 : vector<8x128xf32>
    %706 = arith.addf %704, %705 : vector<8x128xf32>
    %707 = math.sqrt %706 : vector<8x128xf32>
    %708 = arith.addf %674, %707 : vector<8x128xf32>
    %cst_97 = arith.constant -1.000000e+00 : f32
    %709 = vector.broadcast %cst_97 : f32 to vector<1x128xf32>
    %710 = arith.mulf %709, %94 : vector<1x128xf32>
    %cst_98 = arith.constant -1.000000e+00 : f32
    %711 = vector.broadcast %cst_98 : f32 to vector<1x128xf32>
    %712 = arith.mulf %711, %96 : vector<1x128xf32>
    %cst_99 = arith.constant 1.000000e+00 : f32
    %713 = vector.broadcast %cst_99 : f32 to vector<1x128xf32>
    %714 = arith.mulf %713, %98 : vector<1x128xf32>
    %715 = arith.mulf %17, %710 : vector<1x128xf32>
    %716 = arith.mulf %39, %712 : vector<1x128xf32>
    %717 = arith.addf %715, %716 : vector<1x128xf32>
    %718 = arith.mulf %44, %714 : vector<1x128xf32>
    %719 = arith.addf %717, %718 : vector<1x128xf32>
    %720 = arith.mulf %18, %710 : vector<1x128xf32>
    %721 = arith.mulf %40, %712 : vector<1x128xf32>
    %722 = arith.addf %720, %721 : vector<1x128xf32>
    %723 = arith.mulf %47, %714 : vector<1x128xf32>
    %724 = arith.addf %722, %723 : vector<1x128xf32>
    %725 = arith.mulf %19, %710 : vector<1x128xf32>
    %726 = arith.mulf %41, %712 : vector<1x128xf32>
    %727 = arith.addf %725, %726 : vector<1x128xf32>
    %728 = arith.mulf %50, %714 : vector<1x128xf32>
    %729 = arith.addf %727, %728 : vector<1x128xf32>
    %730 = vector.broadcast %719 : vector<1x128xf32> to vector<8x128xf32>
    %731 = arith.subf %730, %178 : vector<8x128xf32>
    %732 = vector.broadcast %724 : vector<1x128xf32> to vector<8x128xf32>
    %733 = arith.subf %732, %186 : vector<8x128xf32>
    %734 = vector.broadcast %729 : vector<1x128xf32> to vector<8x128xf32>
    %735 = arith.subf %734, %194 : vector<8x128xf32>
    %736 = arith.mulf %731, %731 : vector<8x128xf32>
    %737 = arith.mulf %733, %733 : vector<8x128xf32>
    %738 = arith.addf %736, %737 : vector<8x128xf32>
    %739 = arith.mulf %735, %735 : vector<8x128xf32>
    %740 = arith.addf %738, %739 : vector<8x128xf32>
    %741 = math.sqrt %740 : vector<8x128xf32>
    %742 = arith.addf %708, %741 : vector<8x128xf32>
    %cst_100 = arith.constant 2.500000e-01 : f32
    %743 = vector.broadcast %cst_100 : f32 to vector<8x128xf32>
    %744 = arith.mulf %742, %743 : vector<8x128xf32>
    %745 = arith.minimumf %607, %744 : vector<8x128xf32>
    %cst_101 = arith.constant dense<0x7F800000> : vector<128xf32>
    %746 = vector.multi_reduction <minimumf>, %745, %cst_101 [0] : vector<8x128xf32> to vector<128xf32>
    %747 = vector.shape_cast %746 : vector<128xf32> to vector<1x128xf32>
    %c0_102 = arith.constant 0 : index
    %c0_103 = arith.constant 0 : index
    %748 = vector.load %arg4[%c0_102, %c0_103] : memref<1x128xf32, #tpu.memory_space<vmem>>, vector<1x128xf32>
    tpu.vector_store %arg4[%c0_102, %c0_103], %747 {strides = array<i32>} : memref<1x128xf32, #tpu.memory_space<vmem>>, vector<1x128xf32>,
    %c0_104 = arith.constant 0 : index
    %c0_105 = arith.constant 0 : index
    %749 = vector.load %arg3[%c0_104, %c0_105] : memref<8x128xf32, #tpu.memory_space<vmem>>, vector<8x128xf32>
    %cst_106 = arith.constant dense<0xFF800000> : vector<128xf32>
    %750 = vector.multi_reduction <maximumf>, %749, %cst_106 [0] : vector<8x128xf32> to vector<128xf32>
    %751 = vector.shape_cast %750 : vector<128xf32> to vector<1x128xf32>
    %752 = vector.broadcast %751 : vector<1x128xf32> to vector<8x128xf32>
    %753 = arith.subf %749, %752 : vector<8x128xf32>
    %754 = math.exp %753 : vector<8x128xf32>
    %cst_107 = arith.constant dense<0.000000e+00> : vector<128xf32>
    %755 = vector.multi_reduction <add>, %754, %cst_107 [0] : vector<8x128xf32> to vector<128xf32>
    %756 = vector.shape_cast %755 : vector<128xf32> to vector<1x128xf32>
    %757 = vector.broadcast %751 : vector<1x128xf32> to vector<8x128xf32>
    %758 = arith.subf %749, %757 : vector<8x128xf32>
    %759 = math.log %756 : vector<1x128xf32>
    %760 = vector.broadcast %759 : vector<1x128xf32> to vector<8x128xf32>
    %761 = arith.subf %758, %760 : vector<8x128xf32>
    %cst_108 = arith.constant -13.8155107 : f32
    %762 = vector.broadcast %cst_108 : f32 to vector<8x128xf32>
    %763 = arith.maximumf %761, %762 : vector<8x128xf32>
    %cst_109 = arith.constant 1.000000e+01 : f32
    %764 = vector.broadcast %cst_109 : f32 to vector<8x128xf32>
    %765 = arith.mulf %745, %764 : vector<8x128xf32>
    %766 = arith.subf %763, %765 : vector<8x128xf32>
    %cst_110 = arith.constant dense<0xFF800000> : vector<128xf32>
    %767 = vector.multi_reduction <maximumf>, %766, %cst_110 [0] : vector<8x128xf32> to vector<128xf32>
    %768 = vector.shape_cast %767 : vector<128xf32> to vector<1x128xf32>
    %769 = vector.broadcast %768 : vector<1x128xf32> to vector<8x128xf32>
    %770 = arith.subf %766, %769 : vector<8x128xf32>
    %771 = math.exp %770 : vector<8x128xf32>
    %cst_111 = arith.constant dense<0.000000e+00> : vector<128xf32>
    %772 = vector.multi_reduction <add>, %771, %cst_111 [0] : vector<8x128xf32> to vector<128xf32>
    %773 = vector.shape_cast %772 : vector<128xf32> to vector<1x128xf32>
    %774 = math.log %773 : vector<1x128xf32>
    %775 = arith.addf %768, %774 : vector<1x128xf32>
    %cst_112 = arith.constant 0.000000e+00 : f32
    %776 = vector.broadcast %cst_112 : f32 to vector<1x128xf32>
    %777 = arith.subf %776, %775 : vector<1x128xf32>
    %cst_113 = arith.constant 1.000000e+00 : f32
    %778 = vector.broadcast %cst_113 : f32 to vector<1x128xf32>
    %779 = arith.mulf %777, %778 : vector<1x128xf32>
    %c0_114 = arith.constant 0 : index
    %c0_115 = arith.constant 0 : index
    %780 = vector.load %arg5[%c0_114, %c0_115] : memref<1x128xf32, #tpu.memory_space<vmem>>, vector<1x128xf32>
    tpu.vector_store %arg5[%c0_114, %c0_115], %779 {strides = array<i32>} : memref<1x128xf32, #tpu.memory_space<vmem>>, vector<1x128xf32>,
    return
  }
  func.func @transform_0(%arg0: i32) -> (i32, i32) {
    %c0_i32 = arith.constant 0 : i32
    %c0_i32_0 = arith.constant 0 : i32
    return %c0_i32, %arg0 : i32, i32
  }
  func.func @transform_1(%arg0: i32) -> (i32, i32, i32) {
    %c0_i32 = arith.constant 0 : i32
    %c0_i32_0 = arith.constant 0 : i32
    %c0_i32_1 = arith.constant 0 : i32
    return %c0_i32, %c0_i32_0, %arg0 : i32, i32, i32
  }
  func.func @transform_2(%arg0: i32) -> (i32, i32) {
    %c0_i32 = arith.constant 0 : i32
    %c0_i32_0 = arith.constant 0 : i32
    return %c0_i32, %arg0 : i32, i32
  }
  func.func @transform_3(%arg0: i32) -> (i32, i32) {
    %c0_i32 = arith.constant 0 : i32
    %c0_i32_0 = arith.constant 0 : i32
    return %c0_i32, %arg0 : i32, i32
  }
  func.func @transform_4(%arg0: i32) -> (i32, i32) {
    %c0_i32 = arith.constant 0 : i32
    %c0_i32_0 = arith.constant 0 : i32
    return %c0_i32, %arg0 : i32, i32
  }
}

</mosaic_0001>

<bundles_post_ra>
// kernel: tpu_custom_call.1
= control target key start
LH: loop header
LB: loop body
LE: loop exit
PB: predicated region body
PF: predicated region fallthrough
CT: control target
= control target key end

     0   :  { %10 = vsyncpa [#allocation3], 0  ;;  %s1540_s0 = inlined_call_operand.hbm [shape: f32[12,128], index: 0, kind: input, shape index: {}]   ;;  %s1541_s1 = inlined_call_operand.hbm [shape: f32[9,8,128], index: 1, kind: input, shape index: {}]   ;;  %s1542_s2 = inlined_call_operand.hbm [shape: f32[8,128], index: 2, kind: input, shape index: {}]   ;;  %s1543_s3 = inlined_call_operand.hbm [shape: f32[1,128], index: 3, kind: output, shape index: {0}]   ;;  %s1544_s4 = inlined_call_operand.hbm [shape: f32[1,128], index: 4, kind: output, shape index: {1}]  }
   0x1   :  { %11 = vsyncpa [#allocation6], 0 }
   0x2   :  { %12 = vsyncpa [#allocation4], 0 }
   0x3   :  { %13 = vsyncpa [#allocation10], 0  ;;  %s933_s15 = smov [#allocation5]   ;;  %s934_s17 = smov [#allocation2]  }
   0x4   :  { %s31_s16 = sshll.u32 %s933_s15, 4  ;;  %s19_s18 = sshll.u32 %s934_s17, 4  ;;  %s32_s16 = int_to_ptr.vmem [resolvable:$true] %s31_s16  ;;  %s20_s18 = int_to_ptr.vmem [resolvable:$true] %s19_s18 }
   0x5   :  { %s833_s19 = scalar_lea.vmem %s32_s16, 1152  ;;  %p838_p1 = scmp.lt.s32.totalorder %s32_s16, %s32_s16 }
   0x6   :  { %p834_p0 = scmp.ne.s32.totalorder %s32_s16, %s833_s19  ;;  %p839_p2 = scmp.lt.s32.totalorder %s833_s19, %s833_s19 }
   0x8   :  { %p840_p3 = por %p839_p2, %p838_p1 }
   0xa   :  { %p841_p4 = pnand %p840_p3, %p834_p0 }
   0xc   :  { %844 = shalt.err (!%p841_p4)
}
   0xd   :  { %s935_s20 = smov 128   ;;  %s936_s21 = smov 8  }
   0xe   :  { %37 = dma.hbm_to_vmem [thread:$0]  %s1541_s1, 1152, %s32_s16, [#allocation6], %s935_s20, %s935_s20, %s936_s21  }
   0xf   :  { %s853_s24 = scalar_lea.vmem %s20_s18, 256  ;;  %p858_p6 = scmp.lt.s32.totalorder %s20_s18, %s20_s18 }
  0x10   :  { %p854_p5 = scmp.ne.s32.totalorder %s20_s18, %s853_s24  ;;  %p859_p7 = scmp.lt.s32.totalorder %s853_s24, %s853_s24 }
  0x12   :  { %p860_p8 = por %p859_p7, %p858_p6 }
  0x14   :  { %p861_p9 = pnand %p860_p8, %p854_p5 }
  0x16   :  { %864 = shalt.err (!%p861_p9)
}
  0x17   :  { %25 = dma.hbm_to_vmem [thread:$0]  %s1540_s0, 256, %s20_s18, [#allocation3], %s935_s20, %s935_s20, %s936_s21  }
  0x18   :  { %s937_s27 = smov [#allocation7]  }
  0x19   :  { %s44_s28 = sshll.u32 %s937_s27, 4  ;;  %s45_s28 = int_to_ptr.vmem [resolvable:$true] %s44_s28 }
  0x1a   :  { %s873_s29 = scalar_lea.vmem %s45_s28, 128  ;;  %p878_p11 = scmp.lt.s32.totalorder %s45_s28, %s45_s28 }
  0x1b   :  { %p874_p10 = scmp.ne.s32.totalorder %s45_s28, %s873_s29  ;;  %p879_p12 = scmp.lt.s32.totalorder %s873_s29, %s873_s29 }
  0x1d   :  { %p880_p13 = por %p879_p12, %p878_p11 }
  0x1f   :  { %p881_p0 = pnand %p880_p13, %p874_p10 }
  0x21   :  { %884 = shalt.err (!%p881_p0)
}
  0x22   :  { %47 = dma.hbm_to_vmem [thread:$0]  %s1542_s2, 128, %s45_s28, [#allocation6]  }
  0x23   :  { %925 = dma.done.wait [#allocation3], 256  }
  0x24   :  { %926 = vsyncadd [#allocation3], 4294967040 }
  0x25   :  { %927 = dma.done.wait [#allocation6], 1280  }
  0x26   :  { %928 = vsyncadd [#allocation6], 4294966016  ;;  %v60_v0 = vld [vmem:[#allocation2 + $0x6] sm:$0x1]  ;;  %v61_v1 = vld [vmem:[#allocation2 + $0x7] sm:$0x1]  ;;  %v128_v35 = vlaneseq }
  0x27   :  { %v62_v2 = vld [vmem:[#allocation2 + $0x8] sm:$0x1]  ;;  %v66_v3 = vmul.f32 %v60_v0, %v60_v0  ;;  %v67_v4 = vmul.f32 %v61_v1, %v61_v1  ;;  %v702_v9 = vld [vmem:[#allocation7] sm:$0xff]  ;;  %v63_v11 = vld [vmem:[#allocation2 + $0x9] sm:$0x1]  ;;  %s938_s0 = smov [#allocation8]  }
  0x28   :  { %v69_v5 = vmul.f32 %v62_v2, %v62_v2  ;;  %v64_v12 = vld [vmem:[#allocation2 + $0xa] sm:$0x1]  ;;  %v65_v13 = vld [vmem:[#allocation2 + $0xb] sm:$0x1]  ;;  %v703_v17 = vrot.slane %v702_v9, 4  ;;  %v129_v39 = vshrl.u32 %v128_v35, 7 }
  0x29   :  { %v68_v6 = vadd.f32 %v67_v4, %v66_v3  ;;  %v57_v40 = vld [vmem:[#allocation2 + $0x3] sm:$0x1]  ;;  %v58_v42 = vld [vmem:[#allocation2 + $0x4] sm:$0x1]  ;;  %v59_v46 = vld [vmem:[#allocation2 + $0x5] sm:$0x1] }
  0x2a   :  { %v704_v22 = vmax.f32 %v702_v9, %v703_v17  ;;  %v986_v44 = vmul.f32 0.5, %v57_v40  ;;  %v988_v45 = vsub.s32 0, %v129_v39  ;;  %v124_v47 = vmul.f32 0.5, %v58_v42  ;;  %v106_v49 = vld [vmem:[#allocation5] sm:$0xff]  ;;  %v995_v52 = vld [vmem:[#allocation5 + $0x8] sm:$0xff]  ;;  %v112_v53 = vld [vmem:[#allocation5 + $0x18] sm:$0xff] }
  0x2b   :  { %v70_v7 = vadd.f32 %v69_v5, %v68_v6  ;;  %v997_v54 = vld [vmem:[#allocation5 + $0x20] sm:$0xff]  ;;  %v125_v55 = vmul.f32 0.5, %v59_v46  ;;  %v110_v58 = vld [vmem:[#allocation5 + $0x10] sm:$0xff]  ;;  %v116_v63 = vld [vmem:[#allocation5 + $0x28] sm:$0xff]  ;;  %s750_s2 = sshll.u32 %s938_s0, 4  ;;  %s751_s2 = int_to_ptr.vmem [resolvable:$true] %s750_s2 }
  0x2c   :  { %v705_v27 = vrot.slane %v704_v22, 2  ;;  %v131_v50 = vrot.slane %v986_v44, %v988_v45  ;;  %v136_v51 = vrot.slane %v124_v47, %v988_v45  ;;  %v1011_v3 = vmul.f32 -1.0, %v124_v47  ;;  %v122_v17 = vld [vmem:[#allocation5 + $0x40] sm:$0xff]  ;;  %s885_s5 = scalar_lea.vmem %s751_s2, 16  ;;  %s889_s6 = scalar_lea.vmem %s751_s2, 32 }
  0x2d   :  { %v71_v8 = vmax.f32 %v70_v7, 1e-24  ;;  %v142_v56 = vrot.slane %v125_v55, %v988_v45  ;;  %p886_p1 = scmp.ne.s32.totalorder %s751_s2, %s885_s5  ;;  %p890_p2 = scmp.lt.s32.totalorder %s751_s2, %s751_s2 }
  0x2e   :  { %v706_v34 = vmax.f32 %v704_v22, %v705_v27  ;;  %v1001_v59 = vmul.f32 %v131_v50, %v106_v49  ;;  %v137_v60 = vmul.f32 %v136_v51, %v995_v52  ;;  %v1004_v61 = vmul.f32 %v131_v50, %v112_v53  ;;  %p891_p3 = scmp.lt.s32.totalorder %s889_s6, %s885_s5 }
  0x2f   :  { %781 = vrsqrt.f32 %v71_v8  ;;  %v146_v62 = vmul.f32 %v136_v51, %v997_v54  ;;  %v1013_v4 = vmul.f32 %v142_v56, %v110_v58  ;;  %v1017_v8 = vmul.f32 %v142_v56, %v116_v63 }
  0x30   :  { %v707_v38 = vrot.slane %v706_v34, 1  ;;  %v138_v6 = vadd.f32 %v137_v60, %v1001_v59  ;;  %p892_p4 = por %p891_p3, %p890_p2 }
  0x31   :  { %v147_v7 = vadd.f32 %v146_v62, %v1004_v61 }
  0x32   :  { %v708_v43 = vmax.f32 %v706_v34, %v707_v38  ;;  %v1103_v49 = vadd.f32 %v1013_v4, %v138_v6  ;;  %p893_p5 = pnand %p892_p4, %p886_p1 }
  0x34   :  { %v990_v48 = vsub.f32 %v702_v9, %v708_v43 }
  0x36   :  { %1549 = vst [vmem:[#allocation15_spill] sm:$0xff] %v990_v48  ;;  %v710_v57 = vmul.f32 1.442695, %v990_v48 }
  0x3c   :  { %v782_v10 = vpop.eup %781 }
  0x3d   :  { %v974_v14 = vmul.f32 %v782_v10, %v60_v0  ;;  %v976_v15 = vmul.f32 %v782_v10, %v61_v1  ;;  %v978_v16 = vmul.f32 %v782_v10, %v62_v2  ;;  %v118_v0 = vld [vmem:[#allocation5 + $0x30] sm:$0xff]  ;;  %v1007_v1 = vld [vmem:[#allocation5 + $0x38] sm:$0xff]  ;;  %v1009_v2 = vmul.f32 -1.0, %v125_v55 }
  0x3e   :  { %v1019_v9 = vmul.f32 %v131_v50, %v118_v0 }
  0x3f   :  { %v76_v18 = vmul.f32 %v974_v14, %v63_v11  ;;  %v77_v19 = vmul.f32 %v976_v15, %v64_v12  ;;  %v79_v20 = vmul.f32 %v978_v16, %v65_v13 }
  0x41   :  { %v78_v21 = vadd.f32 %v77_v19, %v76_v18  ;;  %v158_v18 = vrot.slane %v1009_v2, %v988_v45  ;;  %v1032_v19 = vmul.f32 %v986_v44, %v974_v14 }
  0x43   :  { %v80_v23 = vadd.f32 %v79_v20, %v78_v21  ;;  %v1036_v20 = vmul.f32 %v986_v44, %v976_v15  ;;  %v1040_v21 = vmul.f32 %v986_v44, %v978_v16  ;;  %v1071_v35 = vmul.f32 %v158_v18, %v110_v58 }
  0x44   :  { %v1089_v42 = vmul.f32 %v158_v18, %v116_v63 }
  0x45   :  { %v81_v24 = vmul.f32 %v80_v23, %v974_v14  ;;  %v83_v25 = vmul.f32 %v80_v23, %v976_v15  ;;  %v85_v26 = vmul.f32 %v80_v23, %v978_v16  ;;  %v1116_v60 = vadd.f32 %v1071_v35, %v138_v6 }
  0x46   :  { %v168_v6 = vrot.slane %v1011_v3, %v988_v45 }
  0x47   :  { %v82_v28 = vsub.f32 %v63_v11, %v81_v24  ;;  %v84_v29 = vsub.f32 %v64_v12, %v83_v25  ;;  %v86_v30 = vsub.f32 %v65_v13, %v85_v26  ;;  %v151_v13 = vmul.f32 %v136_v51, %v1007_v1 }
  0x49   :  { %v87_v31 = vmul.f32 %v82_v28, %v82_v28  ;;  %v88_v32 = vmul.f32 %v84_v29, %v84_v29  ;;  %v90_v33 = vmul.f32 %v86_v30, %v86_v30 }
  0x4b   :  { %v89_v36 = vadd.f32 %v88_v32, %v87_v31  ;;  %v1064_v32 = vmul.f32 %v142_v56, %v122_v17  ;;  %v152_v56 = vadd.f32 %v151_v13, %v1019_v9 }
  0x4d   :  { %v91_v37 = vadd.f32 %v90_v33, %v89_v36 }
  0x4f   :  { %v92_v41 = vmax.f32 %v91_v37, 1e-24 }
  0x51   :  { %783 = vrsqrt.f32 %v92_v41 }
  0x52   :  { %785 = vpow2.f32 %v710_v57  ;;  %v1112_v57 = vmul.f32 %v158_v18, %v122_v17  ;;  %v1130_v18 = vadd.f32 %v1064_v32, %v152_v56 }
  0x5e   :  { %v784_v5 = vpop.eup %783 }
  0x5f   :  { %v1021_v10 = vmul.f32 %v784_v5, %v82_v28  ;;  %v1023_v11 = vmul.f32 %v784_v5, %v84_v29  ;;  %v1025_v12 = vmul.f32 %v784_v5, %v86_v30  ;;  %v786_v5 = vpop.eup %785 }
  0x61   :  { %v97_v22 = vmul.f32 %v1025_v12, %v976_v15  ;;  %v98_v23 = vmul.f32 %v1023_v11, %v978_v16  ;;  %v100_v24 = vmul.f32 %v1021_v10, %v978_v16  ;;  %v101_v25 = vmul.f32 %v1025_v12, %v974_v14 }
  0x62   :  { %v103_v26 = vmul.f32 %v1023_v11, %v974_v14  ;;  %v104_v27 = vmul.f32 %v1021_v10, %v976_v15  ;;  %v1055_v28 = vmul.f32 %v124_v47, %v1021_v10  ;;  %v1058_v29 = vmul.f32 %v124_v47, %v1023_v11 }
  0x63   :  { %v1060_v30 = vsub.f32 %v97_v22, %v98_v23  ;;  %v1062_v31 = vsub.f32 %v100_v24, %v101_v25  ;;  %v1067_v33 = vmul.f32 %v124_v47, %v1025_v12  ;;  %v1122_v22 = vadd.f32 %v1089_v42, %v147_v7 }
  0x64   :  { %v1069_v34 = vsub.f32 %v103_v26, %v104_v27  ;;  %v183_v36 = vadd.f32 %v1055_v28, %v1032_v19  ;;  %v188_v37 = vadd.f32 %v1058_v29, %v1036_v20  ;;  %v1136_v27 = vadd.f32 %v1112_v57, %v152_v56 }
  0x65   :  { %1550 = vst [vmem:[#allocation16_spill] sm:$0xff] %v1067_v33  ;;  %v1078_v38 = vmul.f32 %v125_v55, %v1060_v30  ;;  %v1081_v39 = vmul.f32 %v125_v55, %v1062_v31  ;;  %v193_v40 = vadd.f32 %v1067_v33, %v1040_v21  ;;  %v1087_v41 = vmul.f32 %v1009_v2, %v1060_v30 }
  0x66   :  { %v1092_v43 = vmul.f32 %v125_v55, %v1069_v34  ;;  %v1096_v46 = vmul.f32 %v1009_v2, %v1062_v31  ;;  %v1100_v47 = vmul.f32 %v1009_v2, %v1069_v34  ;;  %v1109_v55 = vadd.f32 %v1017_v8, %v147_v7 }
  0x67   :  { %v185_v50 = vadd.f32 %v1078_v38, %v183_v36  ;;  %v190_v51 = vadd.f32 %v1081_v39, %v188_v37  ;;  %v224_v53 = vadd.f32 %v1087_v41, %v183_v36  ;;  %v712_v7 = vrot.slane %v786_v5, 4 }
  0x68   :  { %v226_v58 = vadd.f32 %v1096_v46, %v188_v37  ;;  %v195_v62 = vadd.f32 %v1092_v43, %v193_v40  ;;  %v228_v23 = vadd.f32 %v1100_v47, %v193_v40  ;;  %v175_v56 = vmul.f32 %v168_v6, %v1007_v1 }
  0x69   :  { %v199_v63 = vrot.slane %v185_v50, %v988_v45  ;;  %v204_v0 = vrot.slane %v190_v51, %v988_v45  ;;  %v232_v13 = vrot.slane %v224_v53, %v988_v45  ;;  %v169_v50 = vmul.f32 %v168_v6, %v995_v52 }
  0x6a   :  { %v237_v17 = vrot.slane %v226_v58, %v988_v45  ;;  %v209_v26 = vrot.slane %v195_v62, %v988_v45  ;;  %v242_v40 = vrot.slane %v228_v23, %v988_v45  ;;  %v1144_v51 = vmul.f32 %v1011_v3, %v1021_v10 }
  0x6b   :  { %v200_v24 = vsub.f32 %v199_v63, %v1103_v49  ;;  %v205_v25 = vsub.f32 %v204_v0, %v1109_v55  ;;  %v233_v36 = vsub.f32 %v232_v13, %v1116_v60  ;;  %v1148_v53 = vmul.f32 %v1011_v3, %v1023_v11 }
  0x6c   :  { %v238_v37 = vsub.f32 %v237_v17, %v1122_v22  ;;  %v172_v58 = vmul.f32 %v168_v6, %v997_v54  ;;  %v210_v62 = vsub.f32 %v209_v26, %v1130_v18  ;;  %v713_v13 = vadd.f32 %v786_v5, %v712_v7 }
  0x6d   :  { %1551 = vst [vmem:[#allocation17_spill] sm:$0xff] %v1148_v53  ;;  %v211_v63 = vmul.f32 %v200_v24, %v200_v24  ;;  %v212_v0 = vmul.f32 %v205_v25, %v205_v25  ;;  %v243_v23 = vsub.f32 %v242_v40, %v1136_v27  ;;  %v244_v52 = vmul.f32 %v233_v36, %v233_v36 }
  0x6e   :  { %v245_v17 = vmul.f32 %v238_v37, %v238_v37  ;;  %v1156_v48 = vmul.f32 %v1011_v3, %v1025_v12  ;;  %v170_v33 = vadd.f32 %v169_v50, %v1001_v59  ;;  %v258_v54 = vadd.f32 %v1144_v51, %v1032_v19 }
  0x6f   :  { %v261_v1 = vadd.f32 %v1148_v53, %v1036_v20  ;;  %v1164_v6 = vmul.f32 -1.0, %v986_v44  ;;  %v173_v5 = vadd.f32 %v172_v58, %v1004_v61  ;;  %v176_v24 = vadd.f32 %v175_v56, %v1019_v9 }
  0x70   :  { %v341_v25 = vmul.f32 -1.0, %v1009_v2  ;;  %v376_v26 = vmul.f32 -1.0, %v1011_v3  ;;  %v213_v7 = vadd.f32 %v212_v0, %v211_v63  ;;  %v214_v36 = vmul.f32 %v210_v62, %v210_v62 }
  0x71   :  { %v259_v59 = vadd.f32 %v258_v54, %v1078_v38  ;;  %v262_v37 = vadd.f32 %v261_v1, %v1081_v39  ;;  %v246_v40 = vadd.f32 %v245_v17, %v244_v52  ;;  %v247_v50 = vmul.f32 %v243_v23, %v243_v23 }
  0x72   :  { %v264_v44 = vadd.f32 %v1156_v48, %v1040_v21  ;;  %v714_v53 = vrot.slane %v713_v13, 2  ;;  %v1175_v61 = vadd.f32 %v170_v33, %v1013_v4  ;;  %v1178_v9 = vadd.f32 %v170_v33, %v1071_v35 }
  0x73   :  { %v294_v2 = vadd.f32 %v258_v54, %v1087_v41  ;;  %v295_v3 = vadd.f32 %v261_v1, %v1096_v46  ;;  %v1183_v58 = vadd.f32 %v173_v5, %v1017_v8  ;;  %v1186_v56 = vadd.f32 %v176_v24, %v1064_v32 }
  0x74   :  { %v265_v62 = vadd.f32 %v264_v44, %v1092_v43  ;;  %v1190_v63 = vmul.f32 %v341_v25, %v1060_v30  ;;  %v1192_v4 = vadd.f32 %v214_v36, %v213_v7  ;;  %v269_v33 = vrot.slane %v259_v59, %v988_v45 }
  0x75   :  { %v274_v35 = vrot.slane %v262_v37, %v988_v45  ;;  %v1197_v0 = vmul.f32 %v341_v25, %v1062_v31  ;;  %v1200_v8 = vadd.f32 %v173_v5, %v1089_v42  ;;  %v1202_v23 = vadd.f32 %v247_v50, %v246_v40 }
  0x76   :  { %v296_v32 = vadd.f32 %v264_v44, %v1100_v47  ;;  %v715_v52 = vadd.f32 %v714_v53, %v713_v13  ;;  %v300_v30 = vrot.slane %v294_v2, %v988_v45  ;;  %v305_v17 = vrot.slane %v295_v3, %v988_v45 }
  0x77   :  { %v1208_v7 = vmul.f32 %v376_v26, %v1021_v10  ;;  %v1211_v36 = vmul.f32 %v376_v26, %v1023_v11  ;;  %v279_v31 = vrot.slane %v265_v62, %v988_v45  ;;  %v343_v42 = vadd.f32 %v1190_v63, %v258_v54 }
  0x78   :  { %v345_v5 = vadd.f32 %v1197_v0, %v261_v1  ;;  %v1217_v59 = vmul.f32 %v341_v25, %v1069_v34  ;;  %v1220_v53 = vadd.f32 %v176_v24, %v1112_v57  ;;  %787 = vrsqrt.f32 %v1192_v4 }
  0x79   :  { %v270_v10 = vsub.f32 %v269_v33, %v1175_v61  ;;  %v275_v13 = vsub.f32 %v274_v35, %v1183_v58  ;;  %789 = vrsqrt.f32 %v1202_v23  ;;  %v310_v11 = vrot.slane %v296_v32, %v988_v45 }
  0x7a   :  { %v1228_v54 = vmul.f32 %v376_v26, %v1025_v12  ;;  %v716_v1 = vrot.slane %v715_v52, 1  ;;  %v326_v34 = vsub.f32 %v300_v30, %v1103_v49  ;;  %v327_v25 = vsub.f32 %v305_v17, %v1109_v55 }
  0x7b   :  { %v378_v57 = vadd.f32 %v1208_v7, %v1032_v19  ;;  %v381_v24 = vadd.f32 %v1211_v36, %v1036_v20  ;;  %v280_v37 = vsub.f32 %v279_v31, %v1186_v56  ;;  %v347_v40 = vadd.f32 %v1217_v59, %v264_v44 }
  0x7c   :  { %1552 = vst [vmem:[#allocation18_spill] sm:$0xff] %v1228_v54  ;;  %v351_v50 = vrot.slane %v343_v42, %v988_v45  ;;  %v356_v12 = vrot.slane %v345_v5, %v988_v45  ;;  %v281_v26 = vmul.f32 %v270_v10, %v270_v10  ;;  %v282_v2 = vmul.f32 %v275_v13, %v275_v13 }
  0x7d   :  { %v301_v3 = vsub.f32 %v300_v30, %v1178_v9  ;;  %v306_v62 = vsub.f32 %v305_v17, %v1200_v8  ;;  %v328_v33 = vsub.f32 %v310_v11, %v1130_v18  ;;  %v384_v19 = vadd.f32 %v1228_v54, %v1040_v21 }
  0x7e   :  { %v1247_v20 = vmul.f32 %v1164_v6, %v974_v14  ;;  %v717_v44 = vadd.f32 %v716_v1, %v715_v52  ;;  %v329_v35 = vmul.f32 %v326_v34, %v326_v34  ;;  %v330_v32 = vmul.f32 %v327_v25, %v327_v25 }
  0x7f   :  { %v379_v31 = vadd.f32 %v378_v57, %v1087_v41  ;;  %v382_v42 = vadd.f32 %v381_v24, %v1096_v46  ;;  %v284_v5 = vmul.f32 %v280_v37, %v280_v37  ;;  %v352_v30 = vsub.f32 %v351_v50, %v1116_v60 }
  0x80   :  { %v357_v17 = vsub.f32 %v356_v12, %v1122_v22  ;;  %v361_v10 = vrot.slane %v347_v40, %v988_v45  ;;  %v283_v13 = vadd.f32 %v282_v2, %v281_v26  ;;  %v311_v21 = vsub.f32 %v310_v11, %v1220_v53 }
  0x81   :  { %v312_v54 = vmul.f32 %v301_v3, %v301_v3  ;;  %v313_v14 = vmul.f32 %v306_v62, %v306_v62  ;;  %v385_v52 = vadd.f32 %v384_v19, %v1100_v47  ;;  %v1258_v1 = vmul.f32 %v1164_v6, %v976_v15 }
  0x82   :  { %v1262_v34 = vmul.f32 %v1164_v6, %v978_v16  ;;  %v331_v25 = vadd.f32 %v330_v32, %v329_v35  ;;  %v332_v37 = vmul.f32 %v328_v33, %v328_v33  ;;  %v389_v50 = vrot.slane %v379_v31, %v988_v45 }
  0x83   :  { %v394_v40 = vrot.slane %v382_v42, %v988_v45  ;;  %v362_v11 = vsub.f32 %v361_v10, %v1136_v27  ;;  %v363_v12 = vmul.f32 %v352_v30, %v352_v30  ;;  %v364_v26 = vmul.f32 %v357_v17, %v357_v17 }
  0x84   :  { %v449_v2 = vadd.f32 %v1247_v20, %v1055_v28  ;;  %v1269_v3 = vadd.f32 %v284_v5, %v283_v13  ;;  %v314_v15 = vadd.f32 %v313_v14, %v312_v54  ;;  %v315_v62 = vmul.f32 %v311_v21, %v311_v21 }
  0x85   :  { %791 = vlog2.f32 %v717_v44  ;;  %v788_v16 = vpop.eup %787  ;;  %vm218_vm0 = vcmp.eq.f32.partialorder %v1192_v4, inf  ;;  %v399_v33 = vrot.slane %v385_v52, %v988_v45  ;;  %v414_v35 = vadd.f32 %v378_v57, %v1190_v63 }
  0x86   :  { %v790_v32 = vpop.eup %789  ;;  %vm251_vm1 = vcmp.eq.f32.partialorder %v1202_v23, inf  ;;  %v390_v31 = vsub.f32 %v389_v50, %v1175_v61  ;;  %v395_v28 = vsub.f32 %v394_v40, %v1183_v58  ;;  %v415_v54 = vadd.f32 %v381_v24, %v1197_v0 }
  0x87   :  { %v1279_v42 = vadd.f32 %v332_v37, %v331_v25  ;;  %v365_v44 = vadd.f32 %v364_v26, %v363_v12  ;;  %v366_v5 = vmul.f32 %v362_v11, %v362_v11  ;;  %v450_v30 = vadd.f32 %v449_v2, %v1087_v41  ;;  %v1553_v11 = vld [vmem:[#allocation16_spill] sm:$0xff] }
  0x88   :  { %v217_v17 = vmul.f32 %v788_v16, %v1192_v4  ;;  %v254_v10 = vand.u32 2147483648, %v1202_v23  ;;  %793 = vrsqrt.f32 %v1269_v3  ;;  %v1285_v57 = vadd.f32 %v315_v62, %v314_v15 }
  0x89   :  { %v250_v13 = vmul.f32 %v790_v32, %v1202_v23  ;;  %v400_v21 = vsub.f32 %v399_v33, %v1186_v56  ;;  %v416_v24 = vadd.f32 %v384_v19, %v1217_v59  ;;  %v420_v14 = vrot.slane %v414_v35, %v988_v45 }
  0x8a   :  { %v401_v52 = vmul.f32 %v390_v31, %v390_v31  ;;  %v402_v25 = vmul.f32 %v395_v28, %v395_v28  ;;  %v425_v37 = vrot.slane %v415_v54, %v988_v45  ;;  %v452_v50 = vadd.f32 %v1258_v1, %v1058_v29 }
  0x8b   :  { %vm220_vm2 = vcmp.eq.f32.partialorder %v1192_v4, 0.0  ;;  %vm253_vm3 = vcmp.eq.f32.partialorder %v1202_v23, 0.0  ;;  %795 = vrsqrt.f32 %v1279_v42  ;;  %v1297_v40 = vadd.f32 %v366_v5, %v365_v44 }
  0x8c   :  { %v455_v19 = vadd.f32 %v1262_v34, %v1553_v11  ;;  %v460_v12 = vrot.slane %v450_v30, %v988_v45  ;;  %v219_v26 = vsel %vm218_vm0, %v1192_v4, %v217_v17  ;;  %v453_v15 = vadd.f32 %v452_v50, %v1096_v46 }
  0x8d   :  { %v484_v29 = vadd.f32 %v449_v2, %v1190_v63  ;;  %v485_v62 = vadd.f32 %v452_v50, %v1197_v0  ;;  %v252_v16 = vsel %vm251_vm1, %v1202_v23, %v250_v13  ;;  %v421_v33 = vsub.f32 %v420_v14, %v1178_v9 }
  0x8e   :  { %v456_v35 = vadd.f32 %v455_v19, %v1100_v47  ;;  %v486_v32 = vadd.f32 %v455_v19, %v1217_v59  ;;  %v403_v31 = vadd.f32 %v402_v25, %v401_v52  ;;  %v404_v28 = vmul.f32 %v400_v21, %v400_v21  ;;  %v1554_v21 = vld [vmem:[#allocation17_spill] sm:$0xff] }
  0x8f   :  { %v426_v54 = vsub.f32 %v425_v37, %v1200_v8  ;;  %v430_v44 = vrot.slane %v416_v24, %v988_v45  ;;  %797 = vrsqrt.f32 %v1297_v40  ;;  %v461_v2 = vsub.f32 %v460_v12, %v1103_v49 }
  0x90   :  { %v465_v5 = vrot.slane %v453_v15, %v988_v45  ;;  %v490_v30 = vrot.slane %v484_v29, %v988_v45  ;;  %v470_v17 = vrot.slane %v456_v35, %v988_v45  ;;  %v495_v13 = vrot.slane %v485_v62, %v988_v45 }
  0x91   :  { %v515_v14 = vadd.f32 %v1247_v20, %v1144_v51  ;;  %v1326_v52 = vadd.f32 %v1258_v1, %v1554_v21  ;;  %v500_v50 = vrot.slane %v486_v32, %v988_v45  ;;  %v519_v11 = vadd.f32 %v1262_v34, %v1156_v48 }
  0x92   :  { %v1328_v24 = vpop.eup %791  ;;  %v466_v25 = vsub.f32 %v465_v5, %v1109_v55  ;;  %v491_v37 = vsub.f32 %v490_v30, %v1116_v60  ;;  %v1335_v19 = vadd.f32 %v404_v28, %v403_v31  ;;  %v496_v12 = vsub.f32 %v495_v13, %v1122_v22 }
  0x93   :  { %1555 = vst [vmem:[#allocation16_spill] sm:$0xff] %v1328_v24  ;;  %v516_v51 = vadd.f32 %v515_v14, %v1087_v41  ;;  %v518_v15 = vadd.f32 %v1326_v52, %v1096_v46  ;;  %v431_v29 = vsub.f32 %v430_v44, %v1220_v53  ;;  %v432_v62 = vmul.f32 %v421_v33, %v421_v33 }
  0x94   :  { %v433_v35 = vmul.f32 %v426_v54, %v426_v54  ;;  %v472_v5 = vmul.f32 %v461_v2, %v461_v2  ;;  %v471_v30 = vsub.f32 %v470_v17, %v1130_v18  ;;  %v473_v32 = vmul.f32 %v466_v25, %v466_v25 }
  0x95   :  { %v520_v21 = vadd.f32 %v519_v11, %v1100_v47  ;;  %v1345_v48 = vrot.slane %v516_v51, %v988_v45  ;;  %v794_v31 = vpop.eup %793  ;;  %v501_v28 = vsub.f32 %v500_v50, %v1136_v27  ;;  %v502_v13 = vmul.f32 %v491_v37, %v491_v37 }
  0x96   :  { %v503_v6 = vmul.f32 %v496_v12, %v496_v12  ;;  %v1349_v24 = vrot.slane %v518_v15, %v988_v45  ;;  %v1556_v33 = vand.u32 2147483648, %v1192_v4  ;;  %v255_v44 = vsel %vm253_vm3, %v254_v10, %v252_v16 }
  0x97   :  { %799 = vrsqrt.f32 %v1285_v57  ;;  %v525_v2 = vsub.f32 %v1345_v48, %v1175_v61  ;;  %v434_v17 = vadd.f32 %v433_v35, %v432_v62  ;;  %v435_v25 = vmul.f32 %v431_v29, %v431_v29 }
  0x98   :  { %v222_v54 = vsel %vm220_vm2, %v1556_v33, %v219_v26  ;;  %v530_v37 = vsub.f32 %v1349_v24, %v1183_v58  ;;  %v534_v50 = vrot.slane %v520_v21, %v988_v45  ;;  %v796_v12 = vpop.eup %795  ;;  %v474_v51 = vadd.f32 %v473_v32, %v472_v5 }
  0x99   :  { %v475_v15 = vmul.f32 %v471_v30, %v471_v30  ;;  %v549_v4 = vadd.f32 %v515_v14, %v1190_v63  ;;  %v550_v23 = vadd.f32 %v1326_v52, %v1197_v0  ;;  %801 = vrsqrt.f32 %v1335_v19 }
  0x9a   :  { %v504_v10 = vadd.f32 %v503_v6, %v502_v13  ;;  %v505_v26 = vmul.f32 %v501_v28, %v501_v28  ;;  %v536_v16 = vmul.f32 %v525_v2, %v525_v2  ;;  %vm288_vm4 = vcmp.eq.f32.partialorder %v1269_v3, inf }
  0x9b   :  { %v291_v29 = vand.u32 2147483648, %v1269_v3  ;;  %v322_v62 = vand.u32 2147483648, %v1285_v57  ;;  %v339_v35 = vand.u32 2147483648, %v1279_v42  ;;  %v1371_v5 = vadd.f32 %v255_v44, %v222_v54 }
  0x9c   :  { %vm290_vm5 = vcmp.eq.f32.partialorder %v1269_v3, 0.0  ;;  %v1374_v63 = vadd.f32 %v435_v25, %v434_v17  ;;  %v535_v0 = vsub.f32 %v534_v50, %v1186_v56  ;;  %v537_v30 = vmul.f32 %v530_v37, %v530_v37  ;;  %v798_v6 = vpop.eup %797 }
  0x9d   :  { %v1377_v32 = vadd.f32 %v475_v15, %v474_v51  ;;  %v551_v21 = vadd.f32 %v519_v11, %v1217_v59  ;;  %v555_v28 = vrot.slane %v549_v4, %v988_v45  ;;  %v560_v13 = vrot.slane %v550_v23, %v988_v45 }
  0x9e   :  { %v287_v33 = vmul.f32 %v794_v31, %v1269_v3  ;;  %vm336_vm6 = vcmp.eq.f32.partialorder %v1279_v42, inf  ;;  %v1384_v54 = vadd.f32 %v505_v26, %v504_v10  ;;  %v538_v44 = vadd.f32 %v537_v30, %v536_v16 }
  0x9f   :  { %v582_v2 = vadd.f32 %v515_v14, %v1078_v38  ;;  %v539_v17 = vmul.f32 %v535_v0, %v535_v0  ;;  %v556_v25 = vsub.f32 %v555_v28, %v1178_v9  ;;  %v561_v37 = vsub.f32 %v560_v13, %v1200_v8 }
  0xa0   :  { %v565_v59 = vrot.slane %v551_v21, %v988_v45  ;;  %vm319_vm7 = vcmp.eq.f32.partialorder %v1285_v57, inf  ;;  %803 = vrsqrt.f32 %v1374_v63  ;;  %v583_v31 = vadd.f32 %v1326_v52, %v1081_v39 }
  0xa1   :  { %v584_v51 = vadd.f32 %v519_v11, %v1092_v43  ;;  %v588_v15 = vrot.slane %v582_v2, %v988_v45  ;;  %805 = vrsqrt.f32 %v1377_v32  ;;  %v567_v4 = vmul.f32 %v556_v25, %v556_v25 }
  0xa2   :  { %v566_v14 = vsub.f32 %v565_v59, %v1220_v53  ;;  %v568_v23 = vmul.f32 %v561_v37, %v561_v37  ;;  %v289_v10 = vsel %vm288_vm4, %v1269_v3, %v287_v33  ;;  %vm338_vm8 = vcmp.eq.f32.partialorder %v1279_v42, 0.0 }
  0xa3   :  { %vm370_vm9 = vcmp.eq.f32.partialorder %v1297_v40, inf  ;;  %vm372_vm10 = vcmp.eq.f32.partialorder %v1297_v40, 0.0  ;;  %807 = vrsqrt.f32 %v1384_v54  ;;  %v1405_v52 = vadd.f32 %v539_v17, %v538_v44 }
  0xa4   :  { %v569_v11 = vadd.f32 %v568_v23, %v567_v4  ;;  %v570_v26 = vmul.f32 %v566_v14, %v566_v14  ;;  %v589_v16 = vsub.f32 %v588_v15, %v1103_v49  ;;  %v800_v0 = vpop.eup %799  ;;  %v593_v30 = vrot.slane %v583_v31, %v988_v45  ;;  %v1557_v14 = vld [vmem:[#allocation18_spill] sm:$0xff] }
  0xa5   :  { %v598_v21 = vrot.slane %v584_v51, %v988_v45  ;;  %v612_v28 = vsub.f32 %v1345_v48, %v1116_v60  ;;  %v613_v13 = vsub.f32 %v1349_v24, %v1122_v22  ;;  %v335_v33 = vmul.f32 %v796_v12, %v1279_v42 }
  0xa6   :  { %v369_v44 = vmul.f32 %v798_v6, %v1297_v40  ;;  %v600_v2 = vmul.f32 %v589_v16, %v589_v16  ;;  %v614_v17 = vsub.f32 %v534_v50, %v1136_v27  ;;  %v594_v49 = vsub.f32 %v593_v30, %v1109_v55  ;;  %v802_v31 = vpop.eup %801 }
  0xa7   :  { %v599_v25 = vsub.f32 %v598_v21, %v1130_v18  ;;  %v615_v37 = vmul.f32 %v612_v28, %v612_v28  ;;  %v616_v59 = vmul.f32 %v613_v13, %v613_v13  ;;  %v1421_v60 = vsel %vm290_vm5, %v291_v29, %v289_v10 }
  0xa8   :  { %v318_v22 = vmul.f32 %v800_v0, %v1285_v57  ;;  %v373_v24 = vand.u32 2147483648, %v1297_v40  ;;  %809 = vrsqrt.f32 %v1405_v52  ;;  %v1426_v48 = vadd.f32 %v570_v26, %v569_v11 }
  0xa9   :  { %v601_v27 = vmul.f32 %v594_v49, %v594_v49  ;;  %v603_v50 = vmul.f32 %v599_v25, %v599_v25  ;;  %v617_v55 = vadd.f32 %v616_v59, %v615_v37  ;;  %v337_v18 = vsel %vm336_vm6, %v1279_v42, %v335_v33 }
  0xaa   :  { %v618_v12 = vmul.f32 %v614_v17, %v614_v17  ;;  %v628_v3 = vadd.f32 %v1247_v20, %v1208_v7  ;;  %v630_v29 = vadd.f32 %v1258_v1, %v1211_v36  ;;  %v371_v6 = vsel %vm370_vm9, %v1297_v40, %v369_v44 }
  0xab   :  { %v407_v51 = vmul.f32 %v802_v31, %v1335_v19  ;;  %v602_v15 = vadd.f32 %v601_v27, %v600_v2  ;;  %v632_v4 = vadd.f32 %v1262_v34, %v1557_v14  ;;  %v1444_v23 = vsel %vm319_vm7, %v1285_v57, %v318_v22 }
  0xac   :  { %vm408_vm11 = vcmp.eq.f32.partialorder %v1335_v19, inf  ;;  %v1447_v7 = vadd.f32 %v618_v12, %v617_v55  ;;  %v629_v36 = vadd.f32 %v628_v3, %v1078_v38  ;;  %811 = vrsqrt.f32 %v1426_v48 }
  0xad   :  { %v1451_v20 = vadd.f32 %v603_v50, %v602_v15  ;;  %v631_v1 = vadd.f32 %v630_v29, %v1081_v39  ;;  %v633_v10 = vadd.f32 %v632_v4, %v1092_v43  ;;  %v804_v34 = vpop.eup %803  ;;  %v340_v11 = vsel %vm338_vm8, %v339_v35, %v337_v18 }
  0xae   :  { %v374_v26 = vsel %vm372_vm10, %v373_v24, %v371_v6  ;;  %v411_v16 = vand.u32 2147483648, %v1335_v19  ;;  %813 = vrsqrt.f32 %v1447_v7  ;;  %v806_v38 = vpop.eup %805  ;;  %v409_v0 = vsel %vm408_vm11, %v1335_v19, %v407_v51 }
  0xaf   :  { %vm410_vm12 = vcmp.eq.f32.partialorder %v1335_v19, 0.0  ;;  %vm439_vm13 = vcmp.eq.f32.partialorder %v1374_v63, inf  ;;  %815 = vrsqrt.f32 %v1451_v20  ;;  %vm321_vm14 = vcmp.eq.f32.partialorder %v1285_v57, 0.0 }
  0xb0   :  { %v808_v39 = vpop.eup %807  ;;  %v442_v43 = vand.u32 2147483648, %v1374_v63  ;;  %v637_v42 = vrot.slane %v629_v36, %v988_v45  ;;  %v642_v40 = vrot.slane %v631_v1, %v988_v45  ;;  %v647_v35 = vrot.slane %v633_v10, %v988_v45 }
  0xb1   :  { %v375_v30 = vadd.f32 %v374_v26, %v340_v11  ;;  %vm441_vm15 = vcmp.eq.f32.partialorder %v1374_v63, 0.0  ;;  %v662_v19 = vadd.f32 %v628_v3, %v1087_v41  ;;  %v663_v21 = vadd.f32 %v630_v29, %v1096_v46 }
  0xb2   :  { %v664_v28 = vadd.f32 %v632_v4, %v1100_v47  ;;  %v412_v13 = vsel %vm410_vm12, %v411_v16, %v409_v0  ;;  %v638_v33 = vsub.f32 %v637_v42, %v1175_v61  ;;  %v643_v44 = vsub.f32 %v642_v40, %v1183_v58 }
  0xb3   :  { %v648_v2 = vsub.f32 %v647_v35, %v1186_v56  ;;  %v438_v17 = vmul.f32 %v804_v34, %v1374_v63  ;;  %v668_v49 = vrot.slane %v662_v19, %v988_v45  ;;  %v673_v25 = vrot.slane %v663_v21, %v988_v45 }
  0xb4   :  { %v678_v37 = vrot.slane %v664_v28, %v988_v45  ;;  %v478_v41 = vmul.f32 %v806_v38, %v1377_v32  ;;  %v649_v46 = vmul.f32 %v638_v33, %v638_v33  ;;  %v650_v59 = vmul.f32 %v643_v44, %v643_v44 }
  0xb5   :  { %v652_v47 = vmul.f32 %v648_v2, %v648_v2  ;;  %v810_v31 = vpop.eup %809  ;;  %v508_v61 = vmul.f32 %v808_v39, %v1384_v54  ;;  %v669_v58 = vsub.f32 %v668_v49, %v1178_v9  ;;  %v674_v56 = vsub.f32 %v673_v25, %v1200_v8  ;;  %v1558_v25 = vld [vmem:[#allocation16_spill] sm:$0xff] }
  0xb6   :  { %v679_v22 = vsub.f32 %v678_v37, %v1220_v53  ;;  %vm479_vm0 = vcmp.eq.f32.partialorder %v1377_v32, inf  ;;  %vm481_vm1 = vcmp.eq.f32.partialorder %v1377_v32, 0.0  ;;  %vm509_vm2 = vcmp.eq.f32.partialorder %v1384_v54, inf }
  0xb7   :  { %v651_v45 = vadd.f32 %v650_v59, %v649_v46  ;;  %v482_v24 = vand.u32 2147483648, %v1377_v32  ;;  %v680_v27 = vmul.f32 %v669_v58, %v669_v58  ;;  %v681_v50 = vmul.f32 %v674_v56, %v674_v56  ;;  %v1559_v56 = vld [vmem:[#allocation15_spill] sm:$0xff] }
  0xb8   :  { %v683_v55 = vmul.f32 %v679_v22, %v679_v22  ;;  %v440_v9 = vsel %vm439_vm13, %v1374_v63, %v438_v17  ;;  %vm511_vm3 = vcmp.eq.f32.partialorder %v1384_v54, 0.0  ;;  %v512_v8 = vand.u32 2147483648, %v1384_v54 }
  0xb9   :  { %v653_v53 = vadd.f32 %v652_v47, %v651_v45  ;;  %v480_v18 = vsel %vm479_vm0, %v1377_v32, %v478_v41  ;;  %v510_v12 = vsel %vm509_vm2, %v1384_v54, %v508_v61  ;;  %v542_v3 = vmul.f32 %v810_v31, %v1405_v52  ;;  %v812_v6 = vpop.eup %811 }
  0xba   :  { %v682_v29 = vadd.f32 %v681_v50, %v680_v27  ;;  %vm543_vm4 = vcmp.eq.f32.partialorder %v1405_v52, inf  ;;  %v293_v15 = vadd.f32 %v1421_v60, %v1371_v5  ;;  %v323_v14 = vsel %vm321_vm14, %v322_v62, %v1444_v23 }
  0xbb   :  { %817 = vrsqrt.f32 %v653_v53  ;;  %v814_v51 = vpop.eup %813  ;;  %v413_v4 = vadd.f32 %v412_v13, %v375_v30  ;;  %v443_v10 = vsel %vm441_vm15, %v442_v43, %v440_v9  ;;  %v483_v34 = vsel %vm481_vm1, %v482_v24, %v480_v18 }
  0xbc   :  { %v684_v36 = vadd.f32 %v683_v55, %v682_v29  ;;  %v816_v1 = vpop.eup %815  ;;  %v513_v11 = vsel %vm511_vm3, %v512_v8, %v510_v12  ;;  %v546_v5 = vand.u32 2147483648, %v1405_v52  ;;  %v544_v60 = vsel %vm543_vm4, %v1405_v52, %v542_v3 }
  0xbd   :  { %vm545_vm5 = vcmp.eq.f32.partialorder %v1405_v52, 0.0  ;;  %v573_v57 = vmul.f32 %v812_v6, %v1426_v48  ;;  %vm574_vm6 = vcmp.eq.f32.partialorder %v1426_v48, inf  ;;  %v606_v62 = vmul.f32 %v816_v1, %v1451_v20 }
  0xbe   :  { %819 = vrsqrt.f32 %v684_v36  ;;  %v621_v63 = vmul.f32 %v814_v51, %v1447_v7  ;;  %v514_v32 = vadd.f32 %v513_v11, %v483_v34  ;;  %vm607_vm7 = vcmp.eq.f32.partialorder %v1451_v20, inf }
  0xbf   :  { %vm622_vm8 = vcmp.eq.f32.partialorder %v1447_v7, inf  ;;  %v324_v54 = vadd.f32 %v323_v14, %v293_v15  ;;  %v444_v23 = vadd.f32 %v443_v10, %v413_v4  ;;  %v547_v26 = vsel %vm545_vm5, %v546_v5, %v544_v60 }
  0xc0   :  { %v577_v16 = vand.u32 2147483648, %v1426_v48  ;;  %v575_v52 = vsel %vm574_vm6, %v1426_v48, %v573_v57  ;;  %vm576_vm9 = vcmp.eq.f32.partialorder %v1426_v48, 0.0  ;;  %v610_v38 = vand.u32 2147483648, %v1451_v20 }
  0xc1   :  { %v625_v0 = vand.u32 2147483648, %v1447_v7  ;;  %v608_v39 = vsel %vm607_vm7, %v1451_v20, %v606_v62  ;;  %vm609_vm10 = vcmp.eq.f32.partialorder %v1451_v20, 0.0  ;;  %v623_v43 = vsel %vm622_vm8, %v1447_v7, %v621_v63 }
  0xc2   :  { %vm624_vm11 = vcmp.eq.f32.partialorder %v1447_v7, 0.0  ;;  %v548_v42 = vadd.f32 %v547_v26, %v514_v32  ;;  %v578_v40 = vsel %vm576_vm9, %v577_v16, %v575_v52  ;;  %v325_v35 = vmul.f32 0.25, %v324_v54 }
  0xc3   :  { %v445_v30 = vmul.f32 0.25, %v444_v23  ;;  %v611_v19 = vsel %vm609_vm10, %v610_v38, %v608_v39  ;;  %v626_v21 = vsel %vm624_vm11, %v625_v0, %v623_v43  ;;  %vm656_vm12 = vcmp.eq.f32.partialorder %v653_v53, inf }
  0xc4   :  { %v579_v48 = vadd.f32 %v578_v40, %v548_v42  ;;  %v659_v13 = vand.u32 2147483648, %v653_v53  ;;  %v627_v33 = vadd.f32 %v626_v21, %v611_v19  ;;  %vm658_vm13 = vcmp.eq.f32.partialorder %v653_v53, 0.0 }
  0xc5   :  { %v446_v2 = vmin.f32 %v325_v35, %v445_v30  ;;  %vm687_vm14 = vcmp.eq.f32.partialorder %v684_v36, inf  ;;  %v690_v49 = vand.u32 2147483648, %v684_v36  ;;  %v719_v7 = vmul.f32 0.6931472, %v1558_v25 }
  0xc6   :  { %v580_v37 = vmul.f32 0.25, %v579_v48  ;;  %vm689_vm15 = vcmp.eq.f32.partialorder %v684_v36, 0.0 }
  0xc7   :  { %v720_v22 = vsub.f32 %v1559_v56, %v719_v7 }
  0xc8   :  { %v818_v28 = vpop.eup %817  ;;  %v581_v61 = vmin.f32 %v446_v2, %v580_v37 }
  0xc9   :  { %v655_v44 = vmul.f32 %v818_v28, %v653_v53  ;;  %v721_v27 = vmax.f32 %v720_v22, -13.815511 }
  0xcb   :  { %v820_v17 = vpop.eup %819  ;;  %v657_v20 = vsel %vm656_vm12, %v653_v53, %v655_v44 }
  0xcc   :  { %v660_v41 = vsel %vm658_vm13, %v659_v13, %v657_v20  ;;  %v686_v46 = vmul.f32 %v820_v17, %v684_v36 }
  0xcd   :  { %v661_v59 = vadd.f32 %v660_v41, %v627_v33 }
  0xce   :  { %v688_v47 = vsel %vm687_vm14, %v684_v36, %v686_v46 }
  0xcf   :  { %v691_v31 = vsel %vm689_vm15, %v690_v49, %v688_v47 }
  0xd0   :  { %v692_v58 = vadd.f32 %v691_v31, %v661_v59 }
  0xd2   :  { %v693_v45 = vmul.f32 0.25, %v692_v58 }
  0xd4   :  { %v694_v24 = vmin.f32 %v581_v61, %v693_v45 }
  0xd6   :  { %v695_v50 = vrot.slane %v694_v24, 4  ;;  %v722_v55 = vmul.f32 10.0, %v694_v24 }
  0xd8   :  { %v696_v9 = vmin.f32 %v694_v24, %v695_v50  ;;  %v723_v8 = vsub.f32 %v721_v27, %v722_v55 }
  0xda   :  { %v697_v53 = vrot.slane %v696_v9, 2  ;;  %v724_v18 = vrot.slane %v723_v8, 4 }
  0xdc   :  { %v698_v12 = vmin.f32 %v696_v9, %v697_v53  ;;  %v725_v3 = vmax.f32 %v723_v8, %v724_v18 }
  0xde   :  { %v699_v29 = vrot.slane %v698_v12, 1  ;;  %v726_v6 = vrot.slane %v725_v3, 2 }
  0xe0   :  { %v700_v51 = vmin.f32 %v698_v12, %v699_v29  ;;  %v727_v15 = vmax.f32 %v725_v3, %v726_v6 }
  0xe2   :  { %701 = vst [vmem:[#allocation8] sm:$0x1] %v700_v51  ;;  %v728_v14 = vrot.slane %v727_v15, 1 }
  0xe3   :  { %896 = shalt.err (!%p893_p5)
}
  0xe4   :  { %753 = dma.vmem_to_hbm [thread:$0]  %s751_s2, 16, %s1543_s3, [#allocation4]   ;;  %v729_v4 = vmax.f32 %v727_v15, %v728_v14 }
  0xe5   :  { %s939_s9 = smov [#allocation9]  }
  0xe6   :  { %v730_v36 = vsub.f32 %v723_v8, %v729_v4  ;;  %s760_s10 = sshll.u32 %s939_s9, 4  ;;  %s761_s10 = int_to_ptr.vmem [resolvable:$true] %s760_s10 }
  0xe7   :  { %s905_s3 = scalar_lea.vmem %s761_s10, 16  ;;  %s909_s11 = scalar_lea.vmem %s761_s10, 32 }
  0xe8   :  { %v731_v1 = vmul.f32 1.442695, %v730_v36  ;;  %p906_p6 = scmp.ne.s32.totalorder %s761_s10, %s905_s3  ;;  %p910_p7 = scmp.lt.s32.totalorder %s761_s10, %s761_s10 }
  0xe9   :  { %p911_p8 = scmp.lt.s32.totalorder %s909_s11, %s905_s3 }
  0xea   :  { %821 = vpow2.f32 %v731_v1 }
  0xeb   :  { %p912_p9 = por %p911_p8, %p910_p7 }
  0xed   :  { %p913_p10 = pnand %p912_p9, %p906_p6 }
  0xf7   :  { %v822_v10 = vpop.eup %821 }
  0xf8   :  { %v733_v34 = vrot.slane %v822_v10, 4 }
  0xfa   :  { %v734_v11 = vadd.f32 %v822_v10, %v733_v34 }
  0xfc   :  { %v735_v5 = vrot.slane %v734_v11, 2 }
  0xfe   :  { %v736_v60 = vadd.f32 %v735_v5, %v734_v11 }
 0x100   :  { %v737_v57 = vrot.slane %v736_v60, 1 }
 0x102   :  { %v738_v62 = vadd.f32 %v737_v57, %v736_v60 }
 0x104   :  { %823 = vlog2.f32 %v738_v62 }
 0x111   :  { %v824_v63 = vpop.eup %823 }
 0x112   :  { %v740_v32 = vmul.f32 0.6931472, %v824_v63 }
 0x114   :  { %v741_v54 = vadd.f32 %v740_v32, %v729_v4 }
 0x116   :  { %v742_v23 = vsub.f32 0.0, %v741_v54 }
 0x118   :  { %743 = vst [vmem:[#allocation9] sm:$0x1] %v742_v23 }
 0x119   :  { %916 = shalt.err (!%p913_p10)
}
 0x11a   :  { %763 = dma.vmem_to_hbm [thread:$0]  %s761_s10, 16, %s1544_s4, [#allocation10]  }
 0x11b   :  { %929 = dma.done.wait [#allocation4], 16  }
 0x11c   :  { %930 = vsyncadd [#allocation4], 4294967280 }
 0x11d   :  { %931 = dma.done.wait [#allocation10], 16  }
 0x11e   :  { %932 = vsyncadd [#allocation10], 4294967280 }
 0x11f   :  { %770 = vsyncpa [#allocation3], 1 }
 0x120   :  { %771 = vsyncpa [#allocation6], 1 }
 0x121   :  { %772 = vsyncpa [#allocation4], 1 }
 0x122   :  { %773 = vsyncpa [#allocation10], 1 }

</bundles_post_ra>
